<compile_context>
chip_gen: v7x
topology: tpu7x:2x2x1
jax: 0.10.0
libtpu: 0.0.40
codegen_flags: <defaults>
</compile_context>

<pallas_src>
import functools

import jax
import jax.numpy as jnp
from jax import lax
from jax.experimental import pallas as pl
from jax.experimental.pallas import tpu as pltpu

GROUPS = 32
EPS = 1e-5


# ----------------------------------------------------------------------------
# Hardware-aware sizing helpers
# ----------------------------------------------------------------------------
def _vmem_capacity_bytes():
    try:
        return int(pltpu.get_tpu_info().vmem_capacity_bytes)
    except Exception:
        return 64 * 1024 * 1024  # conservative fallback (v7x per-core VMEM)


def _choose_row_tile(H, W, C, budget_bytes, elem_bytes=2):
    """Largest H-tile that divides H, keeps TH*W lane-aligned (multiple of 128
    unless the tile is the whole image) and keeps one bf16 input block under
    budget_bytes (the 2-4 MiB sweet spot, not the VMEM ceiling)."""
    valid = [t for t in range(1, H + 1)
             if H % t == 0 and (t == H or (t * W) % 128 == 0)]
    fitting = [t for t in valid if t * W * C * elem_bytes <= budget_bytes]
    return max(fitting) if fitting else min(valid)


def _choose_channel_block(C):
    """Largest proper divisor of C that is a multiple of 128 (lane-aligned),
    else the full C. Gives pass 1 a second parallel axis when possible."""
    cands = [d for d in range(128, C, 128) if C % d == 0]
    return max(cands) if cands else C


# ----------------------------------------------------------------------------
# Pass 1: per-channel sum / sum-of-squares (GroupNorm statistics)
# ----------------------------------------------------------------------------
def _stats_kernel(x_ref, sums_ref, acc_ref, *, TH, W, Cblk):
    """grid=(N, C//Cblk, H//TH); accumulates per-channel sum and sum-of-squares
    over the H-tiles of one (image, channel-block) and writes them on the last
    tile. Group reduction / affine happens in the wrapper (tiny)."""
    h = pl.program_id(2)
    nh = pl.num_programs(2)

    xf = x_ref[0].astype(jnp.float32).reshape(TH * W, Cblk)     # (TH*W, Cblk)
    s1 = jnp.sum(xf, axis=0, keepdims=True)                     # (1, Cblk)
    s2 = jnp.sum(xf * xf, axis=0, keepdims=True)                # (1, Cblk)
    tile = jnp.concatenate([s1, s2], axis=0)                    # (2, Cblk)

    @pl.when(h == 0)
    def _():
        acc_ref[...] = jnp.zeros_like(acc_ref)

    acc_ref[...] += tile

    @pl.when(h == nh - 1)
    def _():
        sums_ref[0] = acc_ref[...]


# ----------------------------------------------------------------------------
# Pass 2: normalize + SiLU + 3x3 conv on H-row tiles with 1-row halos
# ----------------------------------------------------------------------------
def _conv_kernel(ss_ref, xc_ref, top_ref, bot_ref, w_ref, b_ref, o_ref,
                 *, TH, W, C, Cout):
    h = pl.program_id(1)
    nh = pl.num_programs(1)

    ssv = ss_ref[0]                                   # (2, C) f32
    sc = ssv[0:1].reshape(1, 1, C)
    sh = ssv[1:2].reshape(1, 1, C)

    def act(v):                                        # GroupNorm affine + SiLU
        y = v.astype(jnp.float32) * sc + sh
        return y * jax.nn.sigmoid(y)

    # Halo rows at the image boundary must be *zero post-activation* padding;
    # the clamped index_maps deliver a duplicated border row which we mask here.
    a_mid = act(xc_ref[0]).astype(jnp.bfloat16)                             # (TH, W, C)
    a_top = (act(top_ref[0]) * (h > 0).astype(jnp.float32)).astype(jnp.bfloat16)
    a_bot = (act(bot_ref[0]) * (h < nh - 1).astype(jnp.float32)).astype(jnp.bfloat16)
    a_all = jnp.concatenate([a_top, a_mid, a_bot], axis=0)                  # (TH+2, W, C)

    # Three W-shifted taps as bf16 values (no scratch round trip); zero columns
    # implement the padding=1 W-border.
    zcol = jnp.zeros((TH + 2, 1, C), jnp.bfloat16)
    taps = (
        jnp.concatenate([zcol, a_all[:, :W - 1, :]], axis=1),   # dx = 0  (x-1)
        a_all,                                                  # dx = 1  (x)
        jnp.concatenate([a_all[:, 1:, :], zcol], axis=1),       # dx = 2  (x+1)
    )
    taps2d = tuple(t.reshape((TH + 2) * W, C) for t in taps)

    # 9 matmuls: (Cout, C) @ (TH*W, C)^T -> lane-dense (Cout, TH*W), bf16 in /
    # f32 accumulate. MXU is hugely under-utilized here (memory-bound), so the
    # extra matmuls are free while the replicated 3C slab build was not.
    acc = None
    for dy in range(3):
        for dx in range(3):
            patch = taps2d[dx][dy * W: dy * W + TH * W]          # (TH*W, C)
            part = lax.dot_general(
                w_ref[dy, dx], patch,
                dimension_numbers=(((1,), (1,)), ((), ())),
                preferred_element_type=jnp.float32)              # (Cout, TH*W)
            acc = (part + b_ref[...]) if acc is None else (acc + part)

    o_ref[0] = acc.astype(o_ref.dtype)                           # NCHW-direct


# ----------------------------------------------------------------------------
# Wrapper
# ----------------------------------------------------------------------------
@functools.partial(jax.jit, static_argnames=("row_tile",))
def unet_output_layer(x_nchw, gamma, beta, w_oihw, bias, *, row_tile=None):
    """Forward pass matching the PyTorch module. Input/output are NCHW."""
    N, C, H, W = x_nchw.shape
    Cout = w_oihw.shape[0]
    assert C % GROUPS == 0, "GroupNorm(32, C) requires C divisible by 32"
    cpg = C // GROUPS

    # Generation-aware sizing (v7x has 64 MiB VMEM/core vs 128 MiB on v5e/v6e).
    vmem_cap = _vmem_capacity_bytes()
    vmem_limit = min(int(vmem_cap * 3 // 4), 100 * 1024 * 1024)
    conv_budget = (4 if vmem_cap > (64 << 20) else 2) * 1024 * 1024   # bf16 bytes/block
    stats_budget = 2 * conv_budget                                    # no halo/work in pass 1

    TH = _choose_row_tile(H, W, C, conv_budget) if row_tile is None else row_tile
    assert H % TH == 0 and (TH == H or (TH * W) % 128 == 0), (TH, H, W)
    KH = H // TH

    TH1 = _choose_row_tile(H, W, C, stats_budget) if row_tile is None else row_tile
    assert H % TH1 == 0
    KH1 = H // TH1

    Cblk = _choose_channel_block(C)
    KC = C // Cblk

    # glue: bf16 NHWC staging (halves HBM traffic of the dominant reads).
    # TODO(synk): folding this transpose into pass 1 (read NCHW, also emit the
    # bf16 NHWC copy) would remove one full HBM read of x; measure first.
    x_nhwc = jnp.transpose(x_nchw, (0, 2, 3, 1)).astype(jnp.bfloat16)
    bias2 = bias.reshape(Cout, 1).astype(jnp.float32)
    # conv weight as (ky, kx, Cout, Cin): each (Cout, C) tap drives an A@B^T
    # matmul that emits a lane-dense (Cout, S) block directly.
    w4 = jnp.transpose(w_oihw, (2, 3, 0, 1)).astype(jnp.bfloat16)

    # ---- pass 1: per-channel sums ------------------------------------------
    stats = functools.partial(_stats_kernel, TH=TH1, W=W, Cblk=Cblk)
    sums = pl.pallas_call(
        stats,
        out_shape=jax.ShapeDtypeStruct((N, 2, C), jnp.float32),
        grid_spec=pltpu.PrefetchScalarGridSpec(
            num_scalar_prefetch=0,
            grid=(N, KC, KH1),
            in_specs=[pl.BlockSpec((1, TH1, W, Cblk),
                                   lambda n, c, h: (n, h, 0, c))],
            out_specs=pl.BlockSpec((1, 2, Cblk), lambda n, c, h: (n, 0, c)),
            scratch_shapes=[pltpu.VMEM((2, Cblk), jnp.float32)],
        ),
        compiler_params=pltpu.CompilerParams(
            dimension_semantics=("parallel", "parallel", "arbitrary"),
            vmem_limit_bytes=vmem_limit),
    )(x_nhwc)

    # Group-stat finalization: tiny (N, 32)-sized math, left to XLA.
    s1 = sums[:, 0, :]
    s2 = sums[:, 1, :]
    cnt = float(H * W * cpg)
    mean_g = s1.reshape(N, GROUPS, cpg).sum(-1) / cnt
    # E[x^2]-mean^2 in f32 with a clamp; a shifted/Welford scheme would be
    # safer for very large per-group counts, fine at UNet-output scales.
    var_g = jnp.maximum(s2.reshape(N, GROUPS, cpg).sum(-1) / cnt - mean_g * mean_g, 0.0)
    inv_g = lax.rsqrt(var_g + EPS)
    mean_c = jnp.repeat(mean_g, cpg, axis=1)                       # (N, C)
    inv_c = jnp.repeat(inv_g, cpg, axis=1)                         # (N, C)
    scale = gamma.astype(jnp.float32)[None, :] * inv_c
    shift = beta.astype(jnp.float32)[None, :] - mean_c * scale
    ss = jnp.stack([scale, shift], axis=1)                         # (N, 2, C)

    # ---- pass 2: normalize + SiLU + conv ------------------------------------
    conv = functools.partial(_conv_kernel, TH=TH, W=W, C=C, Cout=Cout)
    out_flat = pl.pallas_call(
        conv,
        out_shape=jax.ShapeDtypeStruct((N, Cout, H * W), jnp.float32),
        grid_spec=pltpu.PrefetchScalarGridSpec(
            num_scalar_prefetch=0,
            grid=(N, KH),
            in_specs=[
                pl.BlockSpec((1, 2, C), lambda n, h: (n, 0, 0)),
                pl.BlockSpec((1, TH, W, C), lambda n, h: (n, h, 0, 0)),
                # 1-row halos straight from x via clamped element-row indices
                # (block H-dim of 1 => block index == row index); the boundary
                # duplicates are masked to zero inside the kernel.
                pl.BlockSpec((1, 1, W, C),
                             lambda n, h: (n, jnp.maximum(h * TH - 1, 0), 0, 0)),
                pl.BlockSpec((1, 1, W, C),
                             lambda n, h: (n, jnp.minimum(h * TH + TH, H - 1), 0, 0)),
                pl.BlockSpec((3, 3, Cout, C), lambda n, h: (0, 0, 0, 0)),
                pl.BlockSpec((Cout, 1), lambda n, h: (0, 0)),
            ],
            out_specs=pl.BlockSpec((1, Cout, TH * W), lambda n, h: (n, 0, h)),
        ),
        compiler_params=pltpu.CompilerParams(
            dimension_semantics=("parallel", "parallel"),
            vmem_limit_bytes=vmem_limit),
    )(ss, x_nhwc, x_nhwc, x_nhwc, w4, bias2)

    # (N, Cout, H*W) -> (N, Cout, H, W): row-major reshape, no transpose pass.
    return out_flat.reshape(N, Cout, H, W)


# ----------------------------------------------------------------------------
# Pure-JAX reference
# ----------------------------------------------------------------------------
def reference_forward(x_nchw, gamma, beta, w_oihw, bias):
    """GroupNorm(32) -> SiLU -> Conv2d(3x3, pad=1), f32 reference."""
    N, C, H, W = x_nchw.shape
    cpg = C // GROUPS
    xg = x_nchw.reshape(N, GROUPS, cpg, H, W)
    mean = xg.mean(axis=(2, 3, 4), keepdims=True)
    var = ((xg - mean) ** 2).mean(axis=(2, 3, 4), keepdims=True)
    xn = (xg - mean) / jnp.sqrt(var + EPS)
    xn = xn.reshape(N, C, H, W)
    xn = xn * gamma[None, :, None, None] + beta[None, :, None, None]
    xn = xn * jax.nn.sigmoid(xn)
    out = jax.lax.conv_general_dilated(
        xn, w_oihw, window_strides=(1, 1), padding="SAME",
        dimension_numbers=("NCHW", "OIHW", "NCHW"),
        precision=jax.lax.Precision.HIGHEST)
    return out + bias[None, :, None, None]


if __name__ == "__main__":
    N, C, H, W = 2, 64, 16, 16
    Cout = 8

    key = jax.random.PRNGKey(0)
    kx, kg, kb, kw, kbias = jax.random.split(key, 5)

    x = jax.random.normal(kx, (N, C, H, W), jnp.float32)
    gamma = 1.0 + 0.1 * jax.random.normal(kg, (C,), jnp.float32)
    beta = 0.1 * jax.random.normal(kb, (C,), jnp.float32)
    w = 0.1 * jax.random.normal(kw, (Cout, C, 3, 3), jnp.float32)
    b = 0.1 * jax.random.normal(kbias, (Cout,), jnp.float32)

    ref = reference_forward(x, gamma, beta, w, b)

    # row_tile=8 exercises the multi-tile + halo + stats-accumulation path
    # (H//8 = 2 tiles); row_tile=None uses the auto-chosen tile sizes.
    for rt in (8, None):
        out = jax.block_until_ready(
            unet_output_layer(x, gamma, beta, w, b, row_tile=rt))
        assert out.shape == (N, Cout, H, W), out.shape
        err = float(jnp.max(jnp.abs(out - ref)))
        # bf16 staging of x plus bf16 conv operands (f32 accumulation).
        assert err < 4e-2, (rt, err)

    print("KERNEL_OK")
</pallas_src>

<mosaic_0001>
module attributes {stable_mosaic.version = 11 : i64} {
  func.func @_stats_kernel(%arg0: i32, %arg1: i32, %arg2: i32, %arg3: memref<1x8x16x64xbf16, #tpu.memory_space<vmem>>, %arg4: memref<1x2x64xf32, #tpu.memory_space<vmem>>, %arg5: memref<2x64xf32, #tpu.memory_space<vmem>>) attributes {dimension_semantics = [#tpu.dimension_semantics<parallel>, #tpu.dimension_semantics<parallel>, #tpu.dimension_semantics<arbitrary>], iteration_bounds = array<i64: 2, 1, 2>, scalar_prefetch = 0 : i64, scratch_operands = 1 : i64, tpu.core_type = #tpu.core_type<tc>, window_params = [{transform_indices = @transform_0, window_bounds = array<i64: 1, 8, 16, 64>}, {transform_indices = @transform_1, window_bounds = array<i64: 1, 2, 64>}]} {
    %c0 = arith.constant 0 : index
    %c0_0 = arith.constant 0 : index
    %c0_1 = arith.constant 0 : index
    %c0_2 = arith.constant 0 : index
    %0 = vector.load %arg3[%c0, %c0_0, %c0_1, %c0_2] : memref<1x8x16x64xbf16, #tpu.memory_space<vmem>>, vector<1x8x16x64xbf16>
    %1 = vector.shape_cast %0 : vector<1x8x16x64xbf16> to vector<8x16x64xbf16>
    %2 = arith.extf %1 : vector<8x16x64xbf16> to vector<8x16x64xf32>
    %3 = vector.shape_cast %2 : vector<8x16x64xf32> to vector<128x64xf32>
    %cst = arith.constant dense<0.000000e+00> : vector<64xf32>
    %4 = vector.multi_reduction <add>, %3, %cst [0] : vector<128x64xf32> to vector<64xf32>
    %5 = vector.shape_cast %4 : vector<64xf32> to vector<1x64xf32>
    %6 = arith.mulf %3, %3 : vector<128x64xf32>
    %cst_3 = arith.constant dense<0.000000e+00> : vector<64xf32>
    %7 = vector.multi_reduction <add>, %6, %cst_3 [0] : vector<128x64xf32> to vector<64xf32>
    %8 = vector.shape_cast %7 : vector<64xf32> to vector<1x64xf32>
    %9 = tpu.concatenate %5, %8 in 0 : vector<1x64xf32>, vector<1x64xf32> -> vector<2x64xf32>
    %c0_i32 = arith.constant 0 : i32
    %10 = arith.cmpi eq, %arg2, %c0_i32 : i32
    %11 = arith.extui %10 : i1 to i32
    %c0_i32_4 = arith.constant 0 : i32
    %12 = arith.cmpi ne, %11, %c0_i32_4 : i32
    scf.if %12 {
      %cst_10 = arith.constant 0.000000e+00 : f32
      %19 = vector.broadcast %cst_10 : f32 to vector<2x64xf32>
      %c0_11 = arith.constant 0 : index
      %c0_12 = arith.constant 0 : index
      %20 = vector.load %arg5[%c0_11, %c0_12] : memref<2x64xf32, #tpu.memory_space<vmem>>, vector<2x64xf32>
      tpu.vector_store %arg5[%c0_11, %c0_12], %19 {strides = array<i32>} : memref<2x64xf32, #tpu.memory_space<vmem>>, vector<2x64xf32>,
    } else {
    }
    %c0_5 = arith.constant 0 : index
    %c0_6 = arith.constant 0 : index
    %13 = vector.load %arg5[%c0_5, %c0_6] : memref<2x64xf32, #tpu.memory_space<vmem>>, vector<2x64xf32>
    %14 = arith.addf %13, %9 : vector<2x64xf32>
    %c0_7 = arith.constant 0 : index
    %c0_8 = arith.constant 0 : index
    %15 = vector.load %arg5[%c0_7, %c0_8] : memref<2x64xf32, #tpu.memory_space<vmem>>, vector<2x64xf32>
    tpu.vector_store %arg5[%c0_7, %c0_8], %14 {strides = array<i32>} : memref<2x64xf32, #tpu.memory_space<vmem>>, vector<2x64xf32>,
    %c1_i32 = arith.constant 1 : i32
    %16 = arith.cmpi eq, %arg2, %c1_i32 : i32
    %17 = arith.extui %16 : i1 to i32
    %c0_i32_9 = arith.constant 0 : i32
    %18 = arith.cmpi ne, %17, %c0_i32_9 : i32
    scf.if %18 {
      %c0_10 = arith.constant 0 : index
      %c0_11 = arith.constant 0 : index
      %19 = vector.load %arg5[%c0_10, %c0_11] : memref<2x64xf32, #tpu.memory_space<vmem>>, vector<2x64xf32>
      %c0_12 = arith.constant 0 : index
      %c0_13 = arith.constant 0 : index
      %c0_14 = arith.constant 0 : index
      %20 = vector.load %arg4[%c0_12, %c0_13, %c0_14] : memref<1x2x64xf32, #tpu.memory_space<vmem>>, vector<1x2x64xf32>
      %21 = vector.shape_cast %20 : vector<1x2x64xf32> to vector<2x64xf32>
      %22 = vector.shape_cast %19 : vector<2x64xf32> to vector<1x2x64xf32>
      tpu.vector_store %arg4[%c0_12, %c0_13, %c0_14], %22 {strides = array<i32>} : memref<1x2x64xf32, #tpu.memory_space<vmem>>, vector<1x2x64xf32>,
    } else {
    }
    return
  }
  func.func @transform_0(%arg0: i32, %arg1: i32, %arg2: i32) -> (i32, i32, i32, i32) {
    %c0_i32 = arith.constant 0 : i32
    %c0_i32_0 = arith.constant 0 : i32
    return %arg0, %arg2, %c0_i32, %arg1 : i32, i32, i32, i32
  }
  func.func @transform_1(%arg0: i32, %arg1: i32, %arg2: i32) -> (i32, i32, i32) {
    %c0_i32 = arith.constant 0 : i32
    %c0_i32_0 = arith.constant 0 : i32
    return %arg0, %c0_i32, %arg1 : i32, i32, i32
  }
}

module attributes {stable_mosaic.version = 11 : i64} {
  func.func @_conv_kernel(%arg0: i32, %arg1: i32, %arg2: memref<1x2x64xf32, #tpu.memory_space<vmem>>, %arg3: memref<1x8x16x64xbf16, #tpu.memory_space<vmem>>, %arg4: memref<1x1x16x64xbf16, #tpu.memory_space<vmem>>, %arg5: memref<1x1x16x64xbf16, #tpu.memory_space<vmem>>, %arg6: memref<3x3x8x64xbf16, #tpu.memory_space<vmem>>, %arg7: memref<8x1xf32, #tpu.memory_space<vmem>>, %arg8: memref<1x8x128xf32, #tpu.memory_space<vmem>>) attributes {dimension_semantics = [#tpu.dimension_semantics<parallel>, #tpu.dimension_semantics<parallel>], iteration_bounds = array<i64: 2, 2>, scalar_prefetch = 0 : i64, scratch_operands = 0 : i64, tpu.core_type = #tpu.core_type<tc>, window_params = [{transform_indices = @transform_0, window_bounds = array<i64: 1, 2, 64>}, {transform_indices = @transform_1, window_bounds = array<i64: 1, 8, 16, 64>}, {transform_indices = @transform_2, window_bounds = array<i64: 1, 1, 16, 64>}, {transform_indices = @transform_3, window_bounds = array<i64: 1, 1, 16, 64>}, {pipeline_mode = #tpu.pipeline_mode<synchronous>, transform_indices = @transform_4, window_bounds = array<i64: 3, 3, 8, 64>}, {pipeline_mode = #tpu.pipeline_mode<synchronous>, transform_indices = @transform_5, window_bounds = array<i64: 8, 1>}, {transform_indices = @transform_6, window_bounds = array<i64: 1, 8, 128>}]} {
    %c0 = arith.constant 0 : index
    %c0_0 = arith.constant 0 : index
    %c0_1 = arith.constant 0 : index
    %0 = vector.load %arg2[%c0, %c0_0, %c0_1] : memref<1x2x64xf32, #tpu.memory_space<vmem>>, vector<1x2x64xf32>
    %1 = vector.shape_cast %0 : vector<1x2x64xf32> to vector<2x64xf32>
    %2 = vector.extract_strided_slice %1 {offsets = [0, 0], sizes = [1, 64], strides = [1, 1]} : vector<2x64xf32> to vector<1x64xf32>
    %3 = vector.shape_cast %2 : vector<1x64xf32> to vector<1x1x64xf32>
    %4 = vector.extract_strided_slice %1 {offsets = [1, 0], sizes = [1, 64], strides = [1, 1]} : vector<2x64xf32> to vector<1x64xf32>
    %5 = vector.shape_cast %4 : vector<1x64xf32> to vector<1x1x64xf32>
    %c0_2 = arith.constant 0 : index
    %c0_3 = arith.constant 0 : index
    %c0_4 = arith.constant 0 : index
    %c0_5 = arith.constant 0 : index
    %6 = vector.load %arg3[%c0_2, %c0_3, %c0_4, %c0_5] : memref<1x8x16x64xbf16, #tpu.memory_space<vmem>>, vector<1x8x16x64xbf16>
    %7 = vector.shape_cast %6 : vector<1x8x16x64xbf16> to vector<8x16x64xbf16>
    %8 = arith.extf %7 : vector<8x16x64xbf16> to vector<8x16x64xf32>
    %9 = vector.broadcast %3 : vector<1x1x64xf32> to vector<8x16x64xf32>
    %10 = arith.mulf %8, %9 : vector<8x16x64xf32>
    %11 = vector.broadcast %5 : vector<1x1x64xf32> to vector<8x16x64xf32>
    %12 = arith.addf %10, %11 : vector<8x16x64xf32>
    %13 = arith.negf %12 : vector<8x16x64xf32>
    %14 = math.exp %13 : vector<8x16x64xf32>
    %cst = arith.constant 1.000000e+00 : f32
    %15 = vector.broadcast %cst : f32 to vector<8x16x64xf32>
    %16 = arith.addf %15, %14 : vector<8x16x64xf32>
    %17 = arith.divf %15, %16 : vector<8x16x64xf32>
    %18 = arith.mulf %12, %17 : vector<8x16x64xf32>
    %19 = arith.truncf %18 : vector<8x16x64xf32> to vector<8x16x64xbf16>
    %c0_6 = arith.constant 0 : index
    %c0_7 = arith.constant 0 : index
    %c0_8 = arith.constant 0 : index
    %c0_9 = arith.constant 0 : index
    %20 = vector.load %arg4[%c0_6, %c0_7, %c0_8, %c0_9] : memref<1x1x16x64xbf16, #tpu.memory_space<vmem>>, vector<1x1x16x64xbf16>
    %21 = vector.shape_cast %20 : vector<1x1x16x64xbf16> to vector<1x16x64xbf16>
    %22 = arith.extf %21 : vector<1x16x64xbf16> to vector<1x16x64xf32>
    %23 = vector.broadcast %3 : vector<1x1x64xf32> to vector<1x16x64xf32>
    %24 = arith.mulf %22, %23 : vector<1x16x64xf32>
    %25 = vector.broadcast %5 : vector<1x1x64xf32> to vector<1x16x64xf32>
    %26 = arith.addf %24, %25 : vector<1x16x64xf32>
    %27 = arith.negf %26 : vector<1x16x64xf32>
    %28 = math.exp %27 : vector<1x16x64xf32>
    %cst_10 = arith.constant 1.000000e+00 : f32
    %29 = vector.broadcast %cst_10 : f32 to vector<1x16x64xf32>
    %30 = arith.addf %29, %28 : vector<1x16x64xf32>
    %31 = arith.divf %29, %30 : vector<1x16x64xf32>
    %32 = arith.mulf %26, %31 : vector<1x16x64xf32>
    %c0_i32 = arith.constant 0 : i32
    %33 = arith.cmpi sgt, %arg1, %c0_i32 : i32
    %34 = arith.extui %33 : i1 to i32
    %35 = arith.sitofp %34 : i32 to f32
    %36 = vector.broadcast %35 : f32 to vector<1x16x64xf32>
    %37 = arith.mulf %32, %36 : vector<1x16x64xf32>
    %38 = arith.truncf %37 : vector<1x16x64xf32> to vector<1x16x64xbf16>
    %c0_11 = arith.constant 0 : index
    %c0_12 = arith.constant 0 : index
    %c0_13 = arith.constant 0 : index
    %c0_14 = arith.constant 0 : index
    %39 = vector.load %arg5[%c0_11, %c0_12, %c0_13, %c0_14] : memref<1x1x16x64xbf16, #tpu.memory_space<vmem>>, vector<1x1x16x64xbf16>
    %40 = vector.shape_cast %39 : vector<1x1x16x64xbf16> to vector<1x16x64xbf16>
    %41 = arith.extf %40 : vector<1x16x64xbf16> to vector<1x16x64xf32>
    %42 = vector.broadcast %3 : vector<1x1x64xf32> to vector<1x16x64xf32>
    %43 = arith.mulf %41, %42 : vector<1x16x64xf32>
    %44 = vector.broadcast %5 : vector<1x1x64xf32> to vector<1x16x64xf32>
    %45 = arith.addf %43, %44 : vector<1x16x64xf32>
    %46 = arith.negf %45 : vector<1x16x64xf32>
    %47 = math.exp %46 : vector<1x16x64xf32>
    %cst_15 = arith.constant 1.000000e+00 : f32
    %48 = vector.broadcast %cst_15 : f32 to vector<1x16x64xf32>
    %49 = arith.addf %48, %47 : vector<1x16x64xf32>
    %50 = arith.divf %48, %49 : vector<1x16x64xf32>
    %51 = arith.mulf %45, %50 : vector<1x16x64xf32>
    %c1_i32 = arith.constant 1 : i32
    %52 = arith.cmpi slt, %arg1, %c1_i32 : i32
    %53 = arith.extui %52 : i1 to i32
    %54 = arith.sitofp %53 : i32 to f32
    %55 = vector.broadcast %54 : f32 to vector<1x16x64xf32>
    %56 = arith.mulf %51, %55 : vector<1x16x64xf32>
    %57 = arith.truncf %56 : vector<1x16x64xf32> to vector<1x16x64xbf16>
    %58 = tpu.concatenate %38, %19, %57 in 0 : vector<1x16x64xbf16>, vector<8x16x64xbf16>, vector<1x16x64xbf16> -> vector<10x16x64xbf16>
    %cst_16 = arith.constant 0.000000e+00 : bf16
    %59 = vector.broadcast %cst_16 : bf16 to vector<10x1x64xbf16>
    %60 = vector.extract_strided_slice %58 {offsets = [0, 0, 0], sizes = [10, 15, 64], strides = [1, 1, 1]} : vector<10x16x64xbf16> to vector<10x15x64xbf16>
    %61 = tpu.concatenate %59, %60 in 1 : vector<10x1x64xbf16>, vector<10x15x64xbf16> -> vector<10x16x64xbf16>
    %62 = vector.extract_strided_slice %58 {offsets = [0, 1, 0], sizes = [10, 15, 64], strides = [1, 1, 1]} : vector<10x16x64xbf16> to vector<10x15x64xbf16>
    %63 = tpu.concatenate %62, %59 in 1 : vector<10x15x64xbf16>, vector<10x1x64xbf16> -> vector<10x16x64xbf16>
    %64 = vector.shape_cast %61 : vector<10x16x64xbf16> to vector<160x64xbf16>
    %65 = vector.shape_cast %58 : vector<10x16x64xbf16> to vector<160x64xbf16>
    %66 = vector.shape_cast %63 : vector<10x16x64xbf16> to vector<160x64xbf16>
    %67 = vector.extract_strided_slice %64 {offsets = [0, 0], sizes = [128, 64], strides = [1, 1]} : vector<160x64xbf16> to vector<128x64xbf16>
    %c0_17 = arith.constant 0 : index
    %c0_18 = arith.constant 0 : index
    %c0_19 = arith.constant 0 : index
    %c0_20 = arith.constant 0 : index
    %68 = vector.load %arg6[%c0_17, %c0_18, %c0_19, %c0_20] : memref<3x3x8x64xbf16, #tpu.memory_space<vmem>>, vector<1x1x8x64xbf16>
    %69 = vector.shape_cast %68 : vector<1x1x8x64xbf16> to vector<8x64xbf16>
    %cst_21 = arith.constant dense<0.000000e+00> : vector<8x128xf32>
    %70 = tpu.matmul %69, %67, %cst_21 {dimension_numbers = #tpu.dot_dimension_numbers<[1], [1], [0], [0], [0, 0, 1, 0], [], []>} : vector<8x64xbf16>, vector<128x64xbf16>, vector<8x128xf32> -> vector<8x128xf32>
    %c0_22 = arith.constant 0 : index
    %c0_23 = arith.constant 0 : index
    %71 = vector.load %arg7[%c0_22, %c0_23] : memref<8x1xf32, #tpu.memory_space<vmem>>, vector<8x1xf32>
    %72 = vector.broadcast %71 : vector<8x1xf32> to vector<8x128xf32>
    %73 = arith.addf %70, %72 : vector<8x128xf32>
    %74 = vector.extract_strided_slice %65 {offsets = [0, 0], sizes = [128, 64], strides = [1, 1]} : vector<160x64xbf16> to vector<128x64xbf16>
    %c0_24 = arith.constant 0 : index
    %c1 = arith.constant 1 : index
    %c0_25 = arith.constant 0 : index
    %c0_26 = arith.constant 0 : index
    %75 = vector.load %arg6[%c0_24, %c1, %c0_25, %c0_26] : memref<3x3x8x64xbf16, #tpu.memory_space<vmem>>, vector<1x1x8x64xbf16>
    %76 = vector.shape_cast %75 : vector<1x1x8x64xbf16> to vector<8x64xbf16>
    %cst_27 = arith.constant dense<0.000000e+00> : vector<8x128xf32>
    %77 = tpu.matmul %76, %74, %cst_27 {dimension_numbers = #tpu.dot_dimension_numbers<[1], [1], [0], [0], [0, 0, 1, 0], [], []>} : vector<8x64xbf16>, vector<128x64xbf16>, vector<8x128xf32> -> vector<8x128xf32>
    %78 = arith.addf %73, %77 : vector<8x128xf32>
    %79 = vector.extract_strided_slice %66 {offsets = [0, 0], sizes = [128, 64], strides = [1, 1]} : vector<160x64xbf16> to vector<128x64xbf16>
    %c0_28 = arith.constant 0 : index
    %c2 = arith.constant 2 : index
    %c0_29 = arith.constant 0 : index
    %c0_30 = arith.constant 0 : index
    %80 = vector.load %arg6[%c0_28, %c2, %c0_29, %c0_30] : memref<3x3x8x64xbf16, #tpu.memory_space<vmem>>, vector<1x1x8x64xbf16>
    %81 = vector.shape_cast %80 : vector<1x1x8x64xbf16> to vector<8x64xbf16>
    %cst_31 = arith.constant dense<0.000000e+00> : vector<8x128xf32>
    %82 = tpu.matmul %81, %79, %cst_31 {dimension_numbers = #tpu.dot_dimension_numbers<[1], [1], [0], [0], [0, 0, 1, 0], [], []>} : vector<8x64xbf16>, vector<128x64xbf16>, vector<8x128xf32> -> vector<8x128xf32>
    %83 = arith.addf %78, %82 : vector<8x128xf32>
    %84 = vector.extract_strided_slice %64 {offsets = [16, 0], sizes = [128, 64], strides = [1, 1]} : vector<160x64xbf16> to vector<128x64xbf16>
    %c1_32 = arith.constant 1 : index
    %c0_33 = arith.constant 0 : index
    %c0_34 = arith.constant 0 : index
    %c0_35 = arith.constant 0 : index
    %85 = vector.load %arg6[%c1_32, %c0_33, %c0_34, %c0_35] : memref<3x3x8x64xbf16, #tpu.memory_space<vmem>>, vector<1x1x8x64xbf16>
    %86 = vector.shape_cast %85 : vector<1x1x8x64xbf16> to vector<8x64xbf16>
    %cst_36 = arith.constant dense<0.000000e+00> : vector<8x128xf32>
    %87 = tpu.matmul %86, %84, %cst_36 {dimension_numbers = #tpu.dot_dimension_numbers<[1], [1], [0], [0], [0, 0, 1, 0], [], []>} : vector<8x64xbf16>, vector<128x64xbf16>, vector<8x128xf32> -> vector<8x128xf32>
    %88 = arith.addf %83, %87 : vector<8x128xf32>
    %89 = vector.extract_strided_slice %65 {offsets = [16, 0], sizes = [128, 64], strides = [1, 1]} : vector<160x64xbf16> to vector<128x64xbf16>
    %c1_37 = arith.constant 1 : index
    %c1_38 = arith.constant 1 : index
    %c0_39 = arith.constant 0 : index
    %c0_40 = arith.constant 0 : index
    %90 = vector.load %arg6[%c1_37, %c1_38, %c0_39, %c0_40] : memref<3x3x8x64xbf16, #tpu.memory_space<vmem>>, vector<1x1x8x64xbf16>
    %91 = vector.shape_cast %90 : vector<1x1x8x64xbf16> to vector<8x64xbf16>
    %cst_41 = arith.constant dense<0.000000e+00> : vector<8x128xf32>
    %92 = tpu.matmul %91, %89, %cst_41 {dimension_numbers = #tpu.dot_dimension_numbers<[1], [1], [0], [0], [0, 0, 1, 0], [], []>} : vector<8x64xbf16>, vector<128x64xbf16>, vector<8x128xf32> -> vector<8x128xf32>
    %93 = arith.addf %88, %92 : vector<8x128xf32>
    %94 = vector.extract_strided_slice %66 {offsets = [16, 0], sizes = [128, 64], strides = [1, 1]} : vector<160x64xbf16> to vector<128x64xbf16>
    %c1_42 = arith.constant 1 : index
    %c2_43 = arith.constant 2 : index
    %c0_44 = arith.constant 0 : index
    %c0_45 = arith.constant 0 : index
    %95 = vector.load %arg6[%c1_42, %c2_43, %c0_44, %c0_45] : memref<3x3x8x64xbf16, #tpu.memory_space<vmem>>, vector<1x1x8x64xbf16>
    %96 = vector.shape_cast %95 : vector<1x1x8x64xbf16> to vector<8x64xbf16>
    %cst_46 = arith.constant dense<0.000000e+00> : vector<8x128xf32>
    %97 = tpu.matmul %96, %94, %cst_46 {dimension_numbers = #tpu.dot_dimension_numbers<[1], [1], [0], [0], [0, 0, 1, 0], [], []>} : vector<8x64xbf16>, vector<128x64xbf16>, vector<8x128xf32> -> vector<8x128xf32>
    %98 = arith.addf %93, %97 : vector<8x128xf32>
    %99 = vector.extract_strided_slice %64 {offsets = [32, 0], sizes = [128, 64], strides = [1, 1]} : vector<160x64xbf16> to vector<128x64xbf16>
    %c2_47 = arith.constant 2 : index
    %c0_48 = arith.constant 0 : index
    %c0_49 = arith.constant 0 : index
    %c0_50 = arith.constant 0 : index
    %100 = vector.load %arg6[%c2_47, %c0_48, %c0_49, %c0_50] : memref<3x3x8x64xbf16, #tpu.memory_space<vmem>>, vector<1x1x8x64xbf16>
    %101 = vector.shape_cast %100 : vector<1x1x8x64xbf16> to vector<8x64xbf16>
    %cst_51 = arith.constant dense<0.000000e+00> : vector<8x128xf32>
    %102 = tpu.matmul %101, %99, %cst_51 {dimension_numbers = #tpu.dot_dimension_numbers<[1], [1], [0], [0], [0, 0, 1, 0], [], []>} : vector<8x64xbf16>, vector<128x64xbf16>, vector<8x128xf32> -> vector<8x128xf32>
    %103 = arith.addf %98, %102 : vector<8x128xf32>
    %104 = vector.extract_strided_slice %65 {offsets = [32, 0], sizes = [128, 64], strides = [1, 1]} : vector<160x64xbf16> to vector<128x64xbf16>
    %c2_52 = arith.constant 2 : index
    %c1_53 = arith.constant 1 : index
    %c0_54 = arith.constant 0 : index
    %c0_55 = arith.constant 0 : index
    %105 = vector.load %arg6[%c2_52, %c1_53, %c0_54, %c0_55] : memref<3x3x8x64xbf16, #tpu.memory_space<vmem>>, vector<1x1x8x64xbf16>
    %106 = vector.shape_cast %105 : vector<1x1x8x64xbf16> to vector<8x64xbf16>
    %cst_56 = arith.constant dense<0.000000e+00> : vector<8x128xf32>
    %107 = tpu.matmul %106, %104, %cst_56 {dimension_numbers = #tpu.dot_dimension_numbers<[1], [1], [0], [0], [0, 0, 1, 0], [], []>} : vector<8x64xbf16>, vector<128x64xbf16>, vector<8x128xf32> -> vector<8x128xf32>
    %108 = arith.addf %103, %107 : vector<8x128xf32>
    %109 = vector.extract_strided_slice %66 {offsets = [32, 0], sizes = [128, 64], strides = [1, 1]} : vector<160x64xbf16> to vector<128x64xbf16>
    %c2_57 = arith.constant 2 : index
    %c2_58 = arith.constant 2 : index
    %c0_59 = arith.constant 0 : index
    %c0_60 = arith.constant 0 : index
    %110 = vector.load %arg6[%c2_57, %c2_58, %c0_59, %c0_60] : memref<3x3x8x64xbf16, #tpu.memory_space<vmem>>, vector<1x1x8x64xbf16>
    %111 = vector.shape_cast %110 : vector<1x1x8x64xbf16> to vector<8x64xbf16>
    %cst_61 = arith.constant dense<0.000000e+00> : vector<8x128xf32>
    %112 = tpu.matmul %111, %109, %cst_61 {dimension_numbers = #tpu.dot_dimension_numbers<[1], [1], [0], [0], [0, 0, 1, 0], [], []>} : vector<8x64xbf16>, vector<128x64xbf16>, vector<8x128xf32> -> vector<8x128xf32>
    %113 = arith.addf %108, %112 : vector<8x128xf32>
    %c0_62 = arith.constant 0 : index
    %c0_63 = arith.constant 0 : index
    %c0_64 = arith.constant 0 : index
    %114 = vector.load %arg8[%c0_62, %c0_63, %c0_64] : memref<1x8x128xf32, #tpu.memory_space<vmem>>, vector<1x8x128xf32>
    %115 = vector.shape_cast %114 : vector<1x8x128xf32> to vector<8x128xf32>
    %116 = vector.shape_cast %113 : vector<8x128xf32> to vector<1x8x128xf32>
    tpu.vector_store %arg8[%c0_62, %c0_63, %c0_64], %116 {strides = array<i32>} : memref<1x8x128xf32, #tpu.memory_space<vmem>>, vector<1x8x128xf32>,
    return
  }
  func.func @transform_0(%arg0: i32, %arg1: i32) -> (i32, i32, i32) {
    %c0_i32 = arith.constant 0 : i32
    %c0_i32_0 = arith.constant 0 : i32
    %c0_i32_1 = arith.constant 0 : i32
    return %arg0, %c0_i32, %c0_i32_0 : i32, i32, i32
  }
  func.func @transform_1(%arg0: i32, %arg1: i32) -> (i32, i32, i32, i32) {
    %c0_i32 = arith.constant 0 : i32
    %c0_i32_0 = arith.constant 0 : i32
    %c0_i32_1 = arith.constant 0 : i32
    return %arg0, %arg1, %c0_i32, %c0_i32_0 : i32, i32, i32, i32
  }
  func.func @transform_2(%arg0: i32, %arg1: i32) -> (i32, i32, i32, i32) {
    %c8_i32 = arith.constant 8 : i32
    %0 = arith.muli %arg1, %c8_i32 : i32
    %c1_i32 = arith.constant 1 : i32
    %1 = arith.subi %0, %c1_i32 : i32
    %c0_i32 = arith.constant 0 : i32
    %2 = arith.maxsi %1, %c0_i32 : i32
    %c0_i32_0 = arith.constant 0 : i32
    %c0_i32_1 = arith.constant 0 : i32
    %c0_i32_2 = arith.constant 0 : i32
    return %arg0, %2, %c0_i32_0, %c0_i32_1 : i32, i32, i32, i32
  }
  func.func @transform_3(%arg0: i32, %arg1: i32) -> (i32, i32, i32, i32) {
    %c8_i32 = arith.constant 8 : i32
    %0 = arith.muli %arg1, %c8_i32 : i32
    %c8_i32_0 = arith.constant 8 : i32
    %1 = arith.addi %0, %c8_i32_0 : i32
    %c15_i32 = arith.constant 15 : i32
    %2 = arith.minsi %1, %c15_i32 : i32
    %c0_i32 = arith.constant 0 : i32
    %c0_i32_1 = arith.constant 0 : i32
    %c0_i32_2 = arith.constant 0 : i32
    return %arg0, %2, %c0_i32, %c0_i32_1 : i32, i32, i32, i32
  }
  func.func @transform_4(%arg0: i32, %arg1: i32) -> (i32, i32, i32, i32) {
    %c0_i32 = arith.constant 0 : i32
    %c0_i32_0 = arith.constant 0 : i32
    %c0_i32_1 = arith.constant 0 : i32
    %c0_i32_2 = arith.constant 0 : i32
    %c0_i32_3 = arith.constant 0 : i32
    return %c0_i32, %c0_i32_0, %c0_i32_1, %c0_i32_2 : i32, i32, i32, i32
  }
  func.func @transform_5(%arg0: i32, %arg1: i32) -> (i32, i32) {
    %c0_i32 = arith.constant 0 : i32
    %c0_i32_0 = arith.constant 0 : i32
    %c0_i32_1 = arith.constant 0 : i32
    return %c0_i32, %c0_i32_0 : i32, i32
  }
  func.func @transform_6(%arg0: i32, %arg1: i32) -> (i32, i32, i32) {
    %c0_i32 = arith.constant 0 : i32
    %c0_i32_0 = arith.constant 0 : i32
    return %arg0, %c0_i32, %arg1 : i32, i32, i32
  }
}

</mosaic_0001>

<bundles_post_ra>
// kernel: squeeze.2
= control target key start
LH: loop header
LB: loop body
LE: loop exit
PB: predicated region body
PF: predicated region fallthrough
CT: control target
= control target key end

     0   :  { %s354_s8 = smov 122   ;;  %s355_s9 = smov 124   ;;  %vm7_vm0 = vcmask 15360   ;;  %s653_s0 = inlined_call_operand.vmem [shape: f32[2,64], index: 0, kind: input, shape index: {}]   ;;  %s654_s1 = inlined_call_operand.vmem [shape: f32[2,32,2], index: 1, kind: output, shape index: {}]  }
   0x1   :  { %v4_v0 = vld [vmem:[%s653_s0] sm:$0x3]  ;;  %s353_s0 = smov 126   ;;  %s356_s10 = smov 120  }
   0x2   :  { %5 = vst [vmem:[#allocation0] sm:$0x3] %v4_v0  ;;  %s357_s11 = smov 118   ;;  %s358_s12 = smov 116  }
   0x3   :  { %s359_s13 = smov 114   ;;  %s360_s14 = smov 112  }
   0x4   :  { %s361_s15 = smov 110   ;;  %s362_s16 = smov 108  }
   0x5   :  { %s363_s17 = smov 106   ;;  %s364_s18 = smov 104  }
   0x6   :  { %s365_s19 = smov 102   ;;  %s366_s20 = smov 100  }
   0x7   :  { %s367_s21 = smov 98   ;;  %s368_s22 = smov 96  }
   0x8   :  { %s369_s23 = smov 94   ;;  %s370_s24 = smov 92  }
   0x9   :  { %v11_v1 = vld [vmem:[#allocation0] sm:$0x3]   ;;  %s371_s25 = smov 90   ;;  %s372_s26 = smov 88  }
   0xa   :  { %v27_v2 = vld [vmem:[#allocation0] sm:$0x3]   ;;  %12 = vrot.lane.b32.xlu0 %v11_v1, %s353_s0  ;;  %s373_s27 = smov 86   ;;  %s374_s28 = smov 84  }
   0xb   :  { %28 = vrot.lane.b32.xlu1 %v27_v2, %s354_s8  ;;  %v19_v3 = vld [vmem:[#allocation0] sm:$0x3]   ;;  %s375_s29 = smov 82   ;;  %s376_s30 = smov 80  }
   0xc   :  { %v35_v4 = vld [vmem:[#allocation0] sm:$0x3]   ;;  %s377_s6 = smov 78   ;;  %s378_s7 = smov 76  }
   0xd   :  { %v43_v5 = vld [vmem:[#allocation0] sm:$0x3]   ;;  %s379_s0 = smov 74   ;;  %s380_s8 = smov 72  }
   0xe   :  { %20 = vrot.lane.b32.xlu0 %v19_v3, %s355_s9  ;;  %v51_v6 = vld [vmem:[#allocation0] sm:$0x3]   ;;  %s381_s9 = smov 70  }
   0xf   :  { %36 = vrot.lane.b32.xlu1 %v35_v4, %s356_s10  ;;  %v59_v7 = vld [vmem:[#allocation0] sm:$0x3]   ;;  %s382_s10 = smov 68  }
  0x10   :  { %v67_v8 = vld [vmem:[#allocation0] sm:$0x3]  }
  0x11   :  { %v75_v9 = vld [vmem:[#allocation0] sm:$0x3]  }
  0x12   :  { %44 = vrot.lane.b32.xlu0 %v43_v5, %s357_s11  ;;  %v83_v10 = vld [vmem:[#allocation0] sm:$0x3]   ;;  %s383_s11 = smov 66  }
  0x13   :  { %52 = vrot.lane.b32.xlu1 %v51_v6, %s358_s12  ;;  %v91_v11 = vld [vmem:[#allocation0] sm:$0x3]  }
  0x14   :  { %v99_v12 = vld [vmem:[#allocation0] sm:$0x3]  }
  0x15   :  { %v107_v13 = vld [vmem:[#allocation0] sm:$0x3]  }
  0x16   :  { %60 = vrot.lane.b32.xlu0 %v59_v7, %s359_s13  ;;  %v115_v14 = vld [vmem:[#allocation0] sm:$0x3]  }
  0x17   :  { %68 = vrot.lane.b32.xlu1 %v67_v8, %s360_s14  ;;  %v123_v15 = vld [vmem:[#allocation0] sm:$0x3]  }
  0x18   :  { %v131_v16 = vld [vmem:[#allocation0] sm:$0x3]  }
  0x19   :  { %v139_v17 = vld [vmem:[#allocation0] sm:$0x3]  }
  0x1a   :  { %76 = vrot.lane.b32.xlu0 %v75_v9, %s361_s15  ;;  %v147_v18 = vld [vmem:[#allocation0] sm:$0x3]  }
  0x1b   :  { %84 = vrot.lane.b32.xlu1 %v83_v10, %s362_s16  ;;  %v155_v19 = vld [vmem:[#allocation0] sm:$0x3]  }
  0x1c   :  { %v163_v20 = vld [vmem:[#allocation0] sm:$0x3]  }
  0x1d   :  { %v171_v21 = vld [vmem:[#allocation0] sm:$0x3]  }
  0x1e   :  { %92 = vrot.lane.b32.xlu0 %v91_v11, %s363_s17  ;;  %v179_v22 = vld [vmem:[#allocation0] sm:$0x3]  }
  0x1f   :  { %100 = vrot.lane.b32.xlu1 %v99_v12, %s364_s18  ;;  %v187_v23 = vld [vmem:[#allocation0] sm:$0x3]  }
  0x20   :  { %v195_v24 = vld [vmem:[#allocation0] sm:$0x3]  }
  0x21   :  { %v203_v25 = vld [vmem:[#allocation0] sm:$0x3]  }
  0x22   :  { %108 = vrot.lane.b32.xlu0 %v107_v13, %s365_s19  ;;  %v211_v26 = vld [vmem:[#allocation0] sm:$0x3]  }
  0x23   :  { %116 = vrot.lane.b32.xlu1 %v115_v14, %s366_s20  ;;  %v6_v27 = vld [vmem:[#allocation0] sm:$0x3]  }
  0x24   :  { %8 = vst.msk [vmem:[%s654_s1] sm:$0x1] %vm7_vm0, %v6_v27   ;;  %259 = vst.msk [vmem:[%s654_s1 + $0x1f] sm:$0x2] %vm7_vm0, %v6_v27   ;;  %v219_v28 = vld [vmem:[#allocation0] sm:$0x3]  }
  0x25   :  { %v227_v29 = vld [vmem:[#allocation0] sm:$0x3]  }
  0x26   :  { %124 = vrot.lane.b32.xlu0 %v123_v15, %s367_s21  ;;  %v235_v30 = vld [vmem:[#allocation0] sm:$0x3]  }
  0x27   :  { %132 = vrot.lane.b32.xlu1 %v131_v16, %s368_s22  ;;  %v243_v31 = vld [vmem:[#allocation0] sm:$0x3]  }
  0x28   :  { %v251_v32 = vld [vmem:[#allocation0] sm:$0x3]  }
  0x2a   :  { %140 = vrot.lane.b32.xlu0 %v139_v17, %s369_s23 }
  0x2b   :  { %148 = vrot.lane.b32.xlu1 %v147_v18, %s370_s24 }
  0x2e   :  { %156 = vrot.lane.b32.xlu0 %v155_v19, %s371_s25 }
  0x2f   :  { %164 = vrot.lane.b32.xlu1 %v163_v20, %s372_s26 }
  0x32   :  { %172 = vrot.lane.b32.xlu0 %v171_v21, %s373_s27 }
  0x33   :  { %180 = vrot.lane.b32.xlu1 %v179_v22, %s374_s28 }
  0x36   :  { %188 = vrot.lane.b32.xlu0 %v187_v23, %s375_s29 }
  0x37   :  { %196 = vrot.lane.b32.xlu1 %v195_v24, %s376_s30 }
  0x3a   :  { %204 = vrot.lane.b32.xlu0 %v203_v25, %s377_s6 }
  0x3b   :  { %212 = vrot.lane.b32.xlu1 %v211_v26, %s378_s7 }
  0x3e   :  { %220 = vrot.lane.b32.xlu0 %v219_v28, %s379_s0 }
  0x3f   :  { %228 = vrot.lane.b32.xlu1 %v227_v29, %s380_s8 }
  0x42   :  { %236 = vrot.lane.b32.xlu0 %v235_v30, %s381_s9 }
  0x43   :  { %244 = vrot.lane.b32.xlu1 %v243_v31, %s382_s10 }
  0x46   :  { %252 = vrot.lane.b32.xlu0 %v251_v32, %s383_s11 }
  0x7c   :  { %v13_v33 = vpop.permute.xlu0 %12  }
  0x7d   :  { %v29_v34 = vpop.permute.xlu1 %28   ;;  %260 = vst.msk [vmem:[%s654_s1 + $0x1] sm:$0x1] %vm7_vm0, %v13_v33   ;;  %261 = vst.msk [vmem:[%s654_s1 + $0x20] sm:$0x2] %vm7_vm0, %v13_v33  }
  0x7e   :  { %264 = vst.msk [vmem:[%s654_s1 + $0x3] sm:$0x1] %vm7_vm0, %v29_v34   ;;  %265 = vst.msk [vmem:[%s654_s1 + $0x22] sm:$0x2] %vm7_vm0, %v29_v34  }
  0x80   :  { %v21_v35 = vpop.permute.xlu0 %20  }
  0x81   :  { %v37_v36 = vpop.permute.xlu1 %36   ;;  %262 = vst.msk [vmem:[%s654_s1 + $0x2] sm:$0x1] %vm7_vm0, %v21_v35   ;;  %263 = vst.msk [vmem:[%s654_s1 + $0x21] sm:$0x2] %vm7_vm0, %v21_v35  }
  0x82   :  { %266 = vst.msk [vmem:[%s654_s1 + $0x4] sm:$0x1] %vm7_vm0, %v37_v36   ;;  %267 = vst.msk [vmem:[%s654_s1 + $0x23] sm:$0x2] %vm7_vm0, %v37_v36  }
  0x84   :  { %v45_v37 = vpop.permute.xlu0 %44  }
  0x85   :  { %v53_v38 = vpop.permute.xlu1 %52   ;;  %268 = vst.msk [vmem:[%s654_s1 + $0x5] sm:$0x1] %vm7_vm0, %v45_v37   ;;  %269 = vst.msk [vmem:[%s654_s1 + $0x24] sm:$0x2] %vm7_vm0, %v45_v37  }
  0x86   :  { %270 = vst.msk [vmem:[%s654_s1 + $0x6] sm:$0x1] %vm7_vm0, %v53_v38   ;;  %271 = vst.msk [vmem:[%s654_s1 + $0x25] sm:$0x2] %vm7_vm0, %v53_v38  }
  0x88   :  { %v61_v39 = vpop.permute.xlu0 %60  }
  0x89   :  { %v69_v40 = vpop.permute.xlu1 %68   ;;  %272 = vst.msk [vmem:[%s654_s1 + $0x7] sm:$0x1] %vm7_vm0, %v61_v39   ;;  %273 = vst.msk [vmem:[%s654_s1 + $0x26] sm:$0x2] %vm7_vm0, %v61_v39  }
  0x8a   :  { %274 = vst.msk [vmem:[%s654_s1 + $0x8] sm:$0x1] %vm7_vm0, %v69_v40   ;;  %275 = vst.msk [vmem:[%s654_s1 + $0x27] sm:$0x2] %vm7_vm0, %v69_v40  }
  0x8c   :  { %v77_v41 = vpop.permute.xlu0 %76  }
  0x8d   :  { %v85_v42 = vpop.permute.xlu1 %84   ;;  %276 = vst.msk [vmem:[%s654_s1 + $0x9] sm:$0x1] %vm7_vm0, %v77_v41   ;;  %277 = vst.msk [vmem:[%s654_s1 + $0x28] sm:$0x2] %vm7_vm0, %v77_v41  }
  0x8e   :  { %278 = vst.msk [vmem:[%s654_s1 + $0xa] sm:$0x1] %vm7_vm0, %v85_v42   ;;  %279 = vst.msk [vmem:[%s654_s1 + $0x29] sm:$0x2] %vm7_vm0, %v85_v42  }
  0x90   :  { %v93_v43 = vpop.permute.xlu0 %92  }
  0x91   :  { %v101_v44 = vpop.permute.xlu1 %100   ;;  %280 = vst.msk [vmem:[%s654_s1 + $0xb] sm:$0x1] %vm7_vm0, %v93_v43   ;;  %281 = vst.msk [vmem:[%s654_s1 + $0x2a] sm:$0x2] %vm7_vm0, %v93_v43  }
  0x92   :  { %282 = vst.msk [vmem:[%s654_s1 + $0xc] sm:$0x1] %vm7_vm0, %v101_v44   ;;  %283 = vst.msk [vmem:[%s654_s1 + $0x2b] sm:$0x2] %vm7_vm0, %v101_v44  }
  0x94   :  { %v109_v45 = vpop.permute.xlu0 %108  }
  0x95   :  { %v117_v46 = vpop.permute.xlu1 %116   ;;  %284 = vst.msk [vmem:[%s654_s1 + $0xd] sm:$0x1] %vm7_vm0, %v109_v45   ;;  %285 = vst.msk [vmem:[%s654_s1 + $0x2c] sm:$0x2] %vm7_vm0, %v109_v45  }
  0x96   :  { %286 = vst.msk [vmem:[%s654_s1 + $0xe] sm:$0x1] %vm7_vm0, %v117_v46   ;;  %287 = vst.msk [vmem:[%s654_s1 + $0x2d] sm:$0x2] %vm7_vm0, %v117_v46  }
  0x98   :  { %v125_v47 = vpop.permute.xlu0 %124  }
  0x99   :  { %v133_v48 = vpop.permute.xlu1 %132   ;;  %288 = vst.msk [vmem:[%s654_s1 + $0xf] sm:$0x1] %vm7_vm0, %v125_v47   ;;  %289 = vst.msk [vmem:[%s654_s1 + $0x2e] sm:$0x2] %vm7_vm0, %v125_v47  }
  0x9a   :  { %290 = vst.msk [vmem:[%s654_s1 + $0x10] sm:$0x1] %vm7_vm0, %v133_v48   ;;  %291 = vst.msk [vmem:[%s654_s1 + $0x2f] sm:$0x2] %vm7_vm0, %v133_v48  }
  0x9c   :  { %v141_v49 = vpop.permute.xlu0 %140  }
  0x9d   :  { %v149_v50 = vpop.permute.xlu1 %148   ;;  %292 = vst.msk [vmem:[%s654_s1 + $0x11] sm:$0x1] %vm7_vm0, %v141_v49   ;;  %293 = vst.msk [vmem:[%s654_s1 + $0x30] sm:$0x2] %vm7_vm0, %v141_v49  }
  0x9e   :  { %294 = vst.msk [vmem:[%s654_s1 + $0x12] sm:$0x1] %vm7_vm0, %v149_v50   ;;  %295 = vst.msk [vmem:[%s654_s1 + $0x31] sm:$0x2] %vm7_vm0, %v149_v50  }
  0xa0   :  { %v157_v51 = vpop.permute.xlu0 %156  }
  0xa1   :  { %v165_v52 = vpop.permute.xlu1 %164   ;;  %296 = vst.msk [vmem:[%s654_s1 + $0x13] sm:$0x1] %vm7_vm0, %v157_v51   ;;  %297 = vst.msk [vmem:[%s654_s1 + $0x32] sm:$0x2] %vm7_vm0, %v157_v51  }
  0xa2   :  { %298 = vst.msk [vmem:[%s654_s1 + $0x14] sm:$0x1] %vm7_vm0, %v165_v52   ;;  %299 = vst.msk [vmem:[%s654_s1 + $0x33] sm:$0x2] %vm7_vm0, %v165_v52  }
  0xa4   :  { %v173_v53 = vpop.permute.xlu0 %172  }
  0xa5   :  { %v181_v54 = vpop.permute.xlu1 %180   ;;  %300 = vst.msk [vmem:[%s654_s1 + $0x15] sm:$0x1] %vm7_vm0, %v173_v53   ;;  %301 = vst.msk [vmem:[%s654_s1 + $0x34] sm:$0x2] %vm7_vm0, %v173_v53  }
  0xa6   :  { %302 = vst.msk [vmem:[%s654_s1 + $0x16] sm:$0x1] %vm7_vm0, %v181_v54   ;;  %303 = vst.msk [vmem:[%s654_s1 + $0x35] sm:$0x2] %vm7_vm0, %v181_v54  }
  0xa8   :  { %v189_v55 = vpop.permute.xlu0 %188  }
  0xa9   :  { %v197_v56 = vpop.permute.xlu1 %196   ;;  %304 = vst.msk [vmem:[%s654_s1 + $0x17] sm:$0x1] %vm7_vm0, %v189_v55   ;;  %305 = vst.msk [vmem:[%s654_s1 + $0x36] sm:$0x2] %vm7_vm0, %v189_v55  }
  0xaa   :  { %306 = vst.msk [vmem:[%s654_s1 + $0x18] sm:$0x1] %vm7_vm0, %v197_v56   ;;  %307 = vst.msk [vmem:[%s654_s1 + $0x37] sm:$0x2] %vm7_vm0, %v197_v56  }
  0xac   :  { %v205_v57 = vpop.permute.xlu0 %204  }
  0xad   :  { %v213_v58 = vpop.permute.xlu1 %212   ;;  %308 = vst.msk [vmem:[%s654_s1 + $0x19] sm:$0x1] %vm7_vm0, %v205_v57   ;;  %309 = vst.msk [vmem:[%s654_s1 + $0x38] sm:$0x2] %vm7_vm0, %v205_v57  }
  0xae   :  { %310 = vst.msk [vmem:[%s654_s1 + $0x1a] sm:$0x1] %vm7_vm0, %v213_v58   ;;  %311 = vst.msk [vmem:[%s654_s1 + $0x39] sm:$0x2] %vm7_vm0, %v213_v58  }
  0xb0   :  { %v221_v59 = vpop.permute.xlu0 %220  }
  0xb1   :  { %v229_v60 = vpop.permute.xlu1 %228   ;;  %312 = vst.msk [vmem:[%s654_s1 + $0x1b] sm:$0x1] %vm7_vm0, %v221_v59   ;;  %313 = vst.msk [vmem:[%s654_s1 + $0x3a] sm:$0x2] %vm7_vm0, %v221_v59  }
  0xb2   :  { %314 = vst.msk [vmem:[%s654_s1 + $0x1c] sm:$0x1] %vm7_vm0, %v229_v60   ;;  %315 = vst.msk [vmem:[%s654_s1 + $0x3b] sm:$0x2] %vm7_vm0, %v229_v60  }
  0xb4   :  { %v237_v61 = vpop.permute.xlu0 %236  }
  0xb5   :  { %v245_v62 = vpop.permute.xlu1 %244   ;;  %316 = vst.msk [vmem:[%s654_s1 + $0x1d] sm:$0x1] %vm7_vm0, %v237_v61   ;;  %317 = vst.msk [vmem:[%s654_s1 + $0x3c] sm:$0x2] %vm7_vm0, %v237_v61  }
  0xb6   :  { %318 = vst.msk [vmem:[%s654_s1 + $0x1e] sm:$0x1] %vm7_vm0, %v245_v62   ;;  %319 = vst.msk [vmem:[%s654_s1 + $0x3d] sm:$0x2] %vm7_vm0, %v245_v62  }
  0xb8   :  { %v253_v63 = vpop.permute.xlu0 %252  }
  0xb9   :  { %320 = vst.msk [vmem:[%s654_s1 + $0x1f] sm:$0x1] %vm7_vm0, %v253_v63   ;;  %321 = vst.msk [vmem:[%s654_s1 + $0x3e] sm:$0x2] %vm7_vm0, %v253_v63  }

// kernel: unet_output_layer.2
= control target key start
LH: loop header
LB: loop body
LE: loop exit
PB: predicated region body
PF: predicated region fallthrough
CT: control target
= control target key end

     0   :  { %s547_s6 = smov 0   ;;  %s549_s7 = smov 0   ;;  %s648_s0 = inlined_call_operand.vmem [shape: bf16[2,16,16,64], index: 0, kind: input, shape index: {}]   ;;  %s649_s1 = inlined_call_operand.vmem [shape: f32[2,2,64], index: 1, kind: output, shape index: {}]  }
   0x1   :  { %s551_s8 = smov 0   ;;  %s553_s9 = smov 0  }
   0x2   :  { %s555_s10 = smov 0  }
   0x3 LB: > { %s23_s11 = sadd.s32 1, %s526_s8  ;;  %s30_s12 = sadd.s32 1, %s530_s9  ;;  %s534_s10 = sphi %s555_s10, %s11_s10   ;;  %s530_s9 = sphi %s553_s9, %s653_s9   ;;  %s526_s8 = sphi %s551_s8, %s652_s8   ;;  %s522_s7 = sphi %s549_s7, %s651_s7   ;;  %s518_s6 = sphi %s547_s6, %s650_s6  }
   0x4   : > { %p24_p0 = scmp.ge.s32.totalorder %s23_s11, 2  ;;  %p406_p1 = scmp.ge.s32.totalorder %s534_s10, 1 }
   0x5   : > { %p121_p2 = scmp.lt.s32.totalorder %s534_s10, 5 }
   0x6   : > { %s655_s11 = smov (%p24_p0, %s23_s11), 0  ;;  %s657_s12 = smov (!%p24_p0, %s30_s12), %s530_s9 }
   0x7   : > { %p122_p3 = pnand %p406_p1, %p121_p2  ;;  %p32_p4 = scmp.ge.s32.totalorder %s657_s12, 2 }
   0x8   : > { %s407_s13 = sshll.u32 (!%p122_p3), %s518_s6, 3  ;;  %p152_p5 = scmp.lt.s32.totalorder (!%p122_p3), %s522_s7, 1  ;;  %vm204_vm0 = vcmask (!%p122_p3), 523264   ;;  %vm295_vm1 = vcmask (!%p122_p3), 1040384  }
   0x9   : > { %s659_s12 = smov (%p32_p4, %s657_s12), 0  ;;  %125 = sbr.rel (%p122_p3) target bundleno = 84 (0x54), region = 24 }
   0xa   : > { %p154_p6 = scmp.lt.s32.totalorder (!%p122_p3), %s407_s13, 15  ;;  %p412_p7 = scmp.ne.s32.totalorder (!%p122_p3), %s518_s6, 0 }
  0x10   : > { %s661_s7 = smov (!%p152_p5, %s522_s7), 1  ;;  %s663_s13 = smov (!%p154_p6, %s407_s13), 15 }
  0x11   : > { %s409_s14 = sshll.u32 %s661_s7, 5  ;;  %s411_s15 = sshll.u32 %s661_s7, 1  ;;  %vm301_vm2 = vcmask (!%p412_p7), 517120  }
  0x12   : > { %s408_s16 = sshll.u32 %s663_s13, 1  ;;  %s583_s19 = scalar_lea.vmem %s649_s1, %s411_s15 }
  0x13   : > { %s161_s20 = sadd.s32 %s409_s14, %s408_s16 }
  0x14   : > { %s410_s21 = sshll.u32 %s161_s20, 2 }
  0x15   : > { %s588_s24 = scalar_lea.vmem %s648_s0, %s410_s21 }
  0x16   : > { %v417_v0 = vld [vmem:[%s588_s24] sm:$0xff]   ;;  %v448_v1 = vld [vmem:[%s588_s24 + $0x8] sm:$0xff]   ;;  %v449_v5 = vld [vmem:[%s588_s24 + $0x10] sm:$0xff]  }
  0x17   : > { %v418_v2 = vunpack.c.l.bf16 %v417_v0  ;;  %v419_v3 = vunpack.c.h.bf16 %v417_v0  ;;  %v422_v4 = vunpack.c.l.bf16 %v448_v1  ;;  %v423_v6 = vunpack.c.h.bf16 %v448_v1  ;;  %v450_v13 = vld [vmem:[%s588_s24 + $0x18] sm:$0xff]   ;;  %v451_v23 = vld [vmem:[%s588_s24 + $0x20] sm:$0xff]   ;;  %v452_v36 = vld [vmem:[%s588_s24 + $0x28] sm:$0xff]  }
  0x18   : > { %v426_v11 = vunpack.c.l.bf16 %v449_v5  ;;  %v427_v15 = vunpack.c.h.bf16 %v449_v5  ;;  %v430_v21 = vunpack.c.l.bf16 %v450_v13  ;;  %v431_v26 = vunpack.c.h.bf16 %v450_v13  ;;  %v453_v49 = vld [vmem:[%s588_s24 + $0x30] sm:$0xff]   ;;  %v454_v62 = vld [vmem:[%s588_s24 + $0x38] sm:$0xff]  }
  0x19   : > { %v205_v7 = vsel %vm204_vm0, %v418_v2, 0.0  ;;  %v206_v8 = vsel %vm204_vm0, %v419_v3, 0.0  ;;  %v208_v9 = vsel %vm204_vm0, %v422_v4, 0.0  ;;  %v210_v12 = vsel %vm204_vm0, %v423_v6, 0.0 }
  0x1a   : > { %v207_v10 = vadd.f32 %v206_v8, %v205_v7  ;;  %v212_v16 = vsel %vm204_vm0, %v426_v11, 0.0  ;;  %v242_v18 = vmul.f32 %v418_v2, %v418_v2  ;;  %v243_v19 = vmul.f32 %v419_v3, %v419_v3 }
  0x1b   : > { %v244_v20 = vmul.f32 %v422_v4, %v422_v4  ;;  %v214_v22 = vsel %vm204_vm0, %v427_v15, 0.0  ;;  %v245_v25 = vmul.f32 %v423_v6, %v423_v6  ;;  %v216_v27 = vsel %vm204_vm0, %v430_v21, 0.0 }
  0x1c   : > { %v209_v14 = vadd.f32 %v208_v9, %v207_v10  ;;  %v246_v28 = vmul.f32 %v426_v11, %v426_v11  ;;  %v258_v30 = vsel %vm204_vm0, %v242_v18, 0.0  ;;  %v259_v31 = vsel %vm204_vm0, %v243_v19, 0.0 }
  0x1d   : > { %v261_v32 = vsel %vm204_vm0, %v244_v20, 0.0  ;;  %v434_v33 = vunpack.c.l.bf16 %v451_v23  ;;  %v218_v34 = vsel %vm204_vm0, %v431_v26, 0.0  ;;  %v260_v35 = vadd.f32 %v259_v31, %v258_v30 }
  0x1e   : > { %v211_v17 = vadd.f32 %v210_v12, %v209_v14  ;;  %v247_v38 = vmul.f32 %v427_v15, %v427_v15  ;;  %v263_v39 = vsel %vm204_vm0, %v245_v25, 0.0  ;;  %v435_v40 = vunpack.c.h.bf16 %v451_v23 }
  0x1f   : > { %v220_v41 = vsel %vm204_vm0, %v434_v33, 0.0  ;;  %v262_v42 = vadd.f32 %v261_v32, %v260_v35  ;;  %v248_v44 = vmul.f32 %v430_v21, %v430_v21  ;;  %v265_v45 = vsel %vm204_vm0, %v246_v28, 0.0 }
  0x20   : > { %v213_v24 = vadd.f32 %v212_v16, %v211_v17  ;;  %v438_v46 = vunpack.c.l.bf16 %v452_v36  ;;  %v222_v47 = vsel %vm204_vm0, %v435_v40, 0.0  ;;  %v249_v51 = vmul.f32 %v431_v26, %v431_v26 }
  0x21   : > { %v264_v48 = vadd.f32 %v263_v39, %v262_v42  ;;  %v267_v52 = vsel %vm204_vm0, %v247_v38, 0.0  ;;  %v439_v53 = vunpack.c.h.bf16 %v452_v36  ;;  %v250_v57 = vmul.f32 %v434_v33, %v434_v33 }
  0x22   : > { %v215_v29 = vadd.f32 %v214_v22, %v213_v24  ;;  %v224_v54 = vsel %vm204_vm0, %v438_v46, 0.0  ;;  %v269_v58 = vsel %vm204_vm0, %v248_v44, 0.0  ;;  %v442_v59 = vunpack.c.l.bf16 %v453_v49 }
  0x23   : > { %v266_v55 = vadd.f32 %v265_v45, %v264_v48  ;;  %v226_v60 = vsel %vm204_vm0, %v439_v53, 0.0  ;;  %v251_v0 = vmul.f32 %v435_v40, %v435_v40  ;;  %v271_v1 = vsel %vm204_vm0, %v249_v51, 0.0 }
  0x24   : > { %v217_v37 = vadd.f32 %v216_v27, %v215_v29  ;;  %v443_v2 = vunpack.c.h.bf16 %v453_v49  ;;  %v228_v3 = vsel %vm204_vm0, %v442_v59, 0.0  ;;  %v252_v6 = vmul.f32 %v438_v46, %v438_v46 }
  0x25   : > { %v268_v61 = vadd.f32 %v267_v52, %v266_v55  ;;  %v273_v7 = vsel %vm204_vm0, %v250_v57, 0.0  ;;  %v446_v8 = vunpack.c.l.bf16 %v454_v62  ;;  %v253_v12 = vmul.f32 %v439_v53, %v439_v53 }
  0x26   : > { %v219_v43 = vadd.f32 %v218_v34, %v217_v37  ;;  %v230_v9 = vsel %vm204_vm0, %v443_v2, 0.0  ;;  %v275_v13 = vsel %vm204_vm0, %v251_v0, 0.0  ;;  %v447_v14 = vunpack.c.h.bf16 %v454_v62 }
  0x27   : > { %v270_v4 = vadd.f32 %v269_v58, %v268_v61  ;;  %v232_v15 = vsel %vm204_vm0, %v446_v8, 0.0  ;;  %v254_v18 = vmul.f32 %v442_v59, %v442_v59  ;;  %v277_v19 = vsel %vm204_vm0, %v252_v6, 0.0 }
  0x28   : > { %v221_v50 = vadd.f32 %v220_v41, %v219_v43  ;;  %v234_v20 = vsel %vm204_vm0, %v447_v14, 0.0  ;;  %v255_v23 = vmul.f32 %v443_v2, %v443_v2  ;;  %v279_v24 = vsel %vm204_vm0, %v253_v12, 0.0 }
  0x29   : > { %v272_v10 = vadd.f32 %v271_v1, %v270_v4  ;;  %v256_v27 = vmul.f32 %v446_v8, %v446_v8  ;;  %v281_v28 = vsel %vm204_vm0, %v254_v18, 0.0  ;;  %v257_v31 = vmul.f32 %v447_v14, %v447_v14 }
  0x2a   : > { %v223_v56 = vadd.f32 %v222_v47, %v221_v50  ;;  %v283_v32 = vsel %vm204_vm0, %v255_v23, 0.0  ;;  %v536_v51 = vmov (!%p412_p7), 0.0  }
  0x2b   : > { %v274_v16 = vadd.f32 %v273_v7, %v272_v10  ;;  %v285_v35 = vsel %vm204_vm0, %v256_v27, 0.0  ;;  %v287_v37 = vsel %vm204_vm0, %v257_v31, 0.0  ;;  %302 = vst.msk [vmem:[#allocation2] sm:$0x3] (!%p412_p7), %vm301_vm2, %v536_v51 }
  0x2c   : > { %v225_v63 = vadd.f32 %v224_v54, %v223_v56 }
  0x2d   : > { %v276_v21 = vadd.f32 %v275_v13, %v274_v16 }
  0x2e   : > { %v227_v5 = vadd.f32 %v226_v60, %v225_v63 }
  0x2f   : > { %v278_v25 = vadd.f32 %v277_v19, %v276_v21 }
  0x30   : > { %v229_v11 = vadd.f32 %v228_v3, %v227_v5 }
  0x31   : > { %v280_v29 = vadd.f32 %v279_v24, %v278_v25 }
  0x32   : > { %v231_v17 = vadd.f32 %v230_v9, %v229_v11 }
  0x33   : > { %v282_v33 = vadd.f32 %v281_v28, %v280_v29 }
  0x34   : > { %v233_v22 = vadd.f32 %v232_v15, %v231_v17 }
  0x35   : > { %v284_v36 = vadd.f32 %v283_v32, %v282_v33 }
  0x36   : > { %v235_v26 = vadd.f32 %v234_v20, %v233_v22 }
  0x37   : > { %v286_v39 = vadd.f32 %v285_v35, %v284_v36 }
  0x38   : > { %v236_v30 = vrot.slane %v235_v26, 4 }
  0x39   : > { %v288_v40 = vadd.f32 %v287_v37, %v286_v39 }
  0x3a   : > { %v237_v34 = vadd.f32 %v236_v30, %v235_v26 }
  0x3b   : > { %v289_v42 = vrot.slane %v288_v40, 4 }
  0x3c   : > { %v238_v38 = vrot.slane %v237_v34, 2 }
  0x3d   : > { %v290_v43 = vadd.f32 %v289_v42, %v288_v40 }
  0x3e   : > { %v239_v41 = vadd.f32 %v238_v38, %v237_v34 }
  0x3f   : > { %v291_v45 = vrot.slane %v290_v43, 2 }
  0x40   : > { %v240_v44 = vrot.slane %v239_v41, 1 }
  0x41   : > { %v292_v46 = vadd.f32 %v291_v45, %v290_v43  ;;  %300 = sbr.rel (%p412_p7) target bundleno = 72 (0x48), region = 28 }
  0x42   : > { %v241_v47 = vadd.f32 %v240_v44, %v239_v41 }
  0x43   : > { %v293_v48 = vrot.slane %v292_v46, 1 }
  0x45   : > { %v294_v49 = vadd.f32 %v293_v48, %v292_v46 }
  0x47   : > { %v296_v50 = vsel %vm295_vm1, %v241_v47, %v294_v49 }
  0x48 PF: > { %v303_v52 = vld [vmem:[#allocation2] sm:$0x3]  ;;  %vm305_vm3 = vcmask 517120   ;;  %p413_p8 = scmp.ne.s32.totalorder %s518_s6, 1 }
  0x49   : > { %v304_v53 = vadd.f32 %v303_v52, %v296_v50 }
  0x4a   : > { %310 = sbr.rel (%p413_p8) target bundleno = 84 (0x54), region = 32 }
  0x4b   : > { %306 = vst.msk [vmem:[#allocation2] sm:$0x3] %vm305_vm3, %v304_v53 }
  0x52   : > { %v311_v54 = vld [vmem:[#allocation2] sm:$0x3] }
  0x53   : > { %312 = vst.msk [vmem:[%s583_s19] sm:$0x3] %vm305_vm3, %v311_v54 }
  0x54 PF: > { %s11_s10 = sadd.s32 1, %s534_s10   ;;  %s650_s6 = smov %s526_s8 }
  0x55   : > { %p8_p9 = scmp.ge.s32.totalorder %s11_s10, 6   ;;  %s651_s7 = smov %s530_s9 }
  0x56   : > { %s652_s8 = smov %s655_s11  ;;  %s653_s9 = smov %s659_s12 }
  0x57   :  { %10 = sbr.rel (!%p8_p9) target bundleno = 3 (0x3), region = 62 }

// kernel: unet_output_layer.3
= control target key start
LH: loop header
LB: loop body
LE: loop exit
PB: predicated region body
PF: predicated region fallthrough
CT: control target
= control target key end

     0   :  { %s2079_s21 = smov 0   ;;  %s2081_s22 = smov 0   ;;  %s2749_s0 = inlined_call_operand.vmem [shape: f32[2,2,64], index: 0, kind: input, shape index: {}]   ;;  %s2750_s1 = inlined_call_operand.vmem [shape: bf16[2,16,16,64], index: 1, kind: input, shape index: {}, may-alias: {1,2,3}]   ;;  %s2751_s2 = inlined_call_operand.vmem [shape: bf16[2,16,16,64], index: 2, kind: input, shape index: {}, may-alias: {1,2,3}]   ;;  %s2752_s3 = inlined_call_operand.vmem [shape: bf16[2,16,16,64], index: 3, kind: input, shape index: {}, may-alias: {1,2,3}]   ;;  %s2753_s4 = inlined_call_operand.vmem [shape: bf16[3,3,8,64], index: 4, kind: input, shape index: {}]   ;;  %s2754_s5 = inlined_call_operand.vmem [shape: f32[8,1], index: 5, kind: input, shape index: {}]   ;;  %s2755_s6 = inlined_call_operand.vmem [shape: f32[2,8,256], index: 6, kind: output, shape index: {}]  }
   0x1   :  { %s2083_s23 = smov 0   ;;  %s2085_s24 = smov 0  }
   0x2   :  { %s2087_s25 = smov 0  }
   0x3 LB: > { %s25_s26 = sadd.s32 1, %s2031_s23  ;;  %s28_s27 = sadd.s32 1, %s2035_s24  ;;  %s2039_s25 = sphi %s2087_s25, %s16_s25   ;;  %s2035_s24 = sphi %s2085_s24, %s2764_s24   ;;  %s2031_s23 = sphi %s2083_s23, %s2763_s23   ;;  %s2027_s22 = sphi %s2081_s22, %s2762_s22   ;;  %s2023_s21 = sphi %s2079_s21, %s2761_s21  }
   0x4   : > { %p26_p0 = scmp.ge.s32.totalorder %s25_s26, 2  ;;  %p1473_p1 = scmp.ge.s32.totalorder %s2039_s25, 1 }
   0x5   : > { %p307_p2 = scmp.lt.s32.totalorder %s2039_s25, 5 }
   0x6   : > { %s2766_s26 = smov (%p26_p0, %s25_s26), 0  ;;  %s2768_s27 = smov (!%p26_p0, %s28_s27), %s2035_s24 }
   0x7   : > { %p308_p3 = pnand %p1473_p1, %p307_p2  ;;  %p30_p4 = scmp.ge.s32.totalorder %s2768_s27, 2 }
   0x8   : > { %p375_p5 = scmp.lt.s32.totalorder (!%p308_p3), %s2027_s22, 1  ;;  %s2112_s28 = sshll.u32 (!%p308_p3), %s2023_s21, 3  ;;  %v466_v0 = vlaneseq (!%p308_p3)  ;;  %v2041_v1 = vmov (!%p308_p3), 0.0   ;;  %vm2042_vm0 = vmmov (!%p308_p3), 0   ;;  %vm827_vm1 = vcmask (!%p308_p3), 523264  }
   0x9   : > { %s2770_s27 = smov (%p30_p4, %s2768_s27), 0  ;;  %311 = sbr.rel (%p308_p3) target bundleno = 596 (0x254), region = 44 }
   0xa   : > { %1747 = vmatprep.subr.bf16.mxu0 (!%p308_p3), %v2041_v1  ;;  %p382_p6 = scmp.lt.s32.totalorder (!%p308_p3), %s2112_s28, 15  ;;  %1667 = vmatprep.subr.bf16.mxu1 (!%p308_p3), %v2041_v1  ;;  %s2118_s29 = sadd.s32 (!%p308_p3), 4294967295, %s2112_s28  ;;  %v467_v2 = vshrl.u32 (!%p308_p3), %v466_v0, 7  ;;  %vm764_vm2 = vcmask (!%p308_p3), 1040384   ;;  %vm765_vm3 = vsmask.f32 (!%p308_p3), 256 }
   0xb   : > { %1763 = vmatprep.mubr.msk.bf16.mxu0 (!%p308_p3), %vm2042_vm0, %v2041_v1  ;;  %1683 = vmatprep.mubr.msk.bf16.mxu1 (!%p308_p3), %vm2042_vm0, %v2041_v1  ;;  %p392_p7 = scmp.gt.s32.totalorder (!%p308_p3), %s2118_s29, 0  ;;  %p1481_p8 = scmp.lt.s32.totalorder (!%p308_p3), %s2118_s29, 15  ;;  %vm2300_vm4 = vmand (!%p308_p3), %vm764_vm2, %vm765_vm3  ;;  %vm807_vm5 = vcmask (!%p308_p3), 1047552   ;;  %vm808_vm6 = vsmask.f32 (!%p308_p3), 7424 }
   0xc   : > { %v468_v3 = vsub.s32 (!%p308_p3), 0, %v467_v2  ;;  %v488_v4 = vsub.s32 (!%p308_p3), 1, %v467_v2  ;;  %p648_p9 = scmp.gt.s32.totalorder (!%p308_p3), %s2023_s21, 0  ;;  %p426_p11 = scmp.lt.s32.totalorder (!%p308_p3), %s2023_s21, 1  ;;  %vm2450_vm7 = vmand (!%p308_p3), %vm807_vm5, %vm808_vm6 }
  0x10   : > { %s2772_s22 = smov (!%p375_p5, %s2027_s22), 1  ;;  %s2774_s29 = smov (!%p392_p7, %s2118_s29), 0 }
  0x11   : > { %s383_s30 = scalar_select %p382_p6, %s2112_s28, 15 }
  0x12   : > { %s1474_s7 = sshll.u32 %s2772_s22, 1  ;;  %s2129_s8 = sshll.u32 %s2772_s22, 5 }
  0x13   : > { %s378_s11 = scalar_lea.vmem %s2749_s0, %s1474_s7  ;;  %s1476_s12 = sshll.u32 %s383_s30, 1 }
  0x14   : > { %s386_s13 = sadd.s32 %s2129_s8, %s1476_s12  ;;  %v433_v5 = vld [vmem:[%s378_s11] sm:$0x3]  ;;  %s2776_s29 = smov (!%p1481_p8, %s2774_s29), 15 }
  0x15   : > { %s1478_s14 = sshll.u32 %s386_s13, 2  ;;  %v2144_v6 = vrot.slane %v433_v5, %v468_v3  ;;  %v2147_v8 = vrot.slane %v433_v5, %v488_v4  ;;  %s1486_s18 = sshll.u32 %s2776_s29, 1 }
  0x16   : > { %s2142_s17 = scalar_lea.vmem %s2750_s1, %s1478_s14  ;;  %s400_s19 = sadd.s32 %s1486_s18, %s2129_s8 }
  0x17   : > { %v1540_v7 = vld [vmem:[%s2142_s17] sm:$0xff]   ;;  %v1579_v9 = vld [vmem:[%s2142_s17 + $0x8] sm:$0xff]   ;;  %v1580_v10 = vld [vmem:[%s2142_s17 + $0x10] sm:$0xff]   ;;  %s1488_s20 = sshll.u32 %s400_s19, 2  ;;  %s408_s12 = sadd.s32 8, %s2112_s28 }
  0x18   : > { %v1541_v11 = vunpack.c.l.bf16 %v1540_v7  ;;  %v1542_v12 = vunpack.c.h.bf16 %v1540_v7  ;;  %v1545_v13 = vunpack.c.l.bf16 %v1579_v9  ;;  %v1546_v14 = vunpack.c.h.bf16 %v1579_v9  ;;  %v1581_v15 = vld [vmem:[%s2142_s17 + $0x18] sm:$0xff]   ;;  %v1582_v32 = vld [vmem:[%s2142_s17 + $0x20] sm:$0xff]   ;;  %s402_s9 = scalar_lea.vmem %s2751_s2, %s1488_s20  ;;  %v1583_v56 = vld [vmem:[%s2142_s17 + $0x28] sm:$0xff]   ;;  %p2264_p10 = scmp.lt.s32.totalorder %s408_s12, 15 }
  0x19   : > { %v1549_v16 = vunpack.c.l.bf16 %v1580_v10  ;;  %v1550_v17 = vunpack.c.h.bf16 %v1580_v10  ;;  %v1553_v24 = vunpack.c.l.bf16 %v1581_v15  ;;  %v1554_v25 = vunpack.c.h.bf16 %v1581_v15  ;;  %v1572_v37 = vld [vmem:[%s402_s9] sm:$0xff]   ;;  %s2230_s10 = scalar_select %p648_p9, 1, 0 }
  0x1a   : > { %v470_v18 = vmul.f32 %v1541_v11, %v2144_v6  ;;  %v471_v19 = vmul.f32 %v1542_v12, %v2144_v6  ;;  %v472_v20 = vmul.f32 %v1545_v13, %v2144_v6  ;;  %v473_v21 = vmul.f32 %v1546_v14, %v2144_v6  ;;  %s2778_s12 = smov (!%p2264_p10, %s408_s12), 15  ;;  %s2782_s21 = smov (!%p426_p11, %s2023_s21), 1 }
  0x1b   : > { %v474_v22 = vmul.f32 %v1549_v16, %v2144_v6  ;;  %v475_v23 = vmul.f32 %v1550_v17, %v2144_v6  ;;  %v476_v38 = vmul.f32 %v1553_v24, %v2144_v6  ;;  %v477_v39 = vmul.f32 %v1554_v25, %v2144_v6  ;;  %s650_s11 = scvt.s32.f32 %s2230_s10  ;;  %s2780_s12 = smov (!%p2264_p10, %s2778_s12), 15 }
  0x1c   : > { %v2160_v26 = vadd.f32 %v2147_v8, %v470_v18  ;;  %v2163_v27 = vadd.f32 %v2147_v8, %v471_v19  ;;  %v2166_v28 = vadd.f32 %v2147_v8, %v472_v20  ;;  %v2169_v29 = vadd.f32 %v2147_v8, %v473_v21  ;;  %v1584_v19 = vld [vmem:[%s2142_s17 + $0x30] sm:$0xff]   ;;  %s1493_s28 = sshll.u32 %s2780_s12, 1  ;;  %s429_s10 = sadd.s32 %s1474_s7, %s2782_s21 }
  0x1d   : > { %v2173_v30 = vadd.f32 %v2147_v8, %v474_v22  ;;  %v2176_v31 = vadd.f32 %v2147_v8, %v475_v23  ;;  %v1573_v40 = vunpack.c.l.bf16 %v1572_v37  ;;  %v1574_v41 = vunpack.c.h.bf16 %v1572_v37  ;;  %s417_s14 = sadd.s32 %s1493_s28, %s2129_s8 }
  0x1e   : > { %v1498_v33 = vmul.f32 -1.442695, %v2160_v26  ;;  %v1499_v34 = vmul.f32 -1.442695, %v2163_v27  ;;  %v1500_v35 = vmul.f32 -1.442695, %v2166_v28  ;;  %v1557_v44 = vunpack.c.l.bf16 %v1582_v32 }
  0x1f   : > { %v1501_v36 = vmul.f32 -1.442695, %v2169_v29  ;;  %v1502_v42 = vmul.f32 -1.442695, %v2173_v30  ;;  %v1503_v43 = vmul.f32 -1.442695, %v2176_v31  ;;  %v630_v45 = vmul.f32 %v1573_v40, %v2144_v6 }
  0x20   : > { %1921 = vpow2.f32 %v1498_v33  ;;  %v631_v46 = vmul.f32 %v1574_v41, %v2144_v6  ;;  %v1558_v47 = vunpack.c.h.bf16 %v1582_v32  ;;  %v2193_v48 = vadd.f32 %v2147_v8, %v476_v38  ;;  %s1495_s15 = sshll.u32 %s417_s14, 2 }
  0x21   : > { %1923 = vpow2.f32 %v1499_v34  ;;  %v2196_v49 = vadd.f32 %v630_v45, %v2147_v8  ;;  %v2202_v51 = vadd.f32 %v2147_v8, %v477_v39  ;;  %v478_v52 = vmul.f32 %v1557_v44, %v2144_v6  ;;  %v1585_v45 = vld [vmem:[%s2142_s17 + $0x38] sm:$0xff]   ;;  %s419_s8 = scalar_lea.vmem %s2752_s3, %s1495_s15 }
  0x22   : > { %1925 = vpow2.f32 %v1500_v35  ;;  %v2199_v50 = vadd.f32 %v631_v46, %v2147_v8  ;;  %v479_v55 = vmul.f32 %v1558_v47, %v2144_v6  ;;  %v1504_v57 = vmul.f32 -1.442695, %v2193_v48  ;;  %s678_s18 = scalar_select %p426_p11, 1, 0 }
  0x23   : > { %1927 = vpow2.f32 %v1501_v36  ;;  %v1514_v53 = vmul.f32 -1.442695, %v2196_v49  ;;  %v1505_v58 = vmul.f32 -1.442695, %v2202_v51  ;;  %v2212_v59 = vadd.f32 %v2147_v8, %v478_v52 }
  0x24   : > { %1929 = vpow2.f32 %v1502_v42  ;;  %v1515_v54 = vmul.f32 -1.442695, %v2199_v50  ;;  %v1561_v60 = vunpack.c.l.bf16 %v1583_v56  ;;  %v2215_v62 = vadd.f32 %v2147_v8, %v479_v55  ;;  %s679_s19 = scvt.s32.f32 %s678_s18 }
  0x25   : > { %1931 = vpow2.f32 %v1503_v43  ;;  %v1562_v4 = vunpack.c.h.bf16 %v1583_v56  ;;  %v1506_v9 = vmul.f32 -1.442695, %v2212_v59  ;;  %v1565_v24 = vunpack.c.l.bf16 %v1584_v19 }
  0x26   : > { %1933 = vpow2.f32 %v1514_v53  ;;  %v480_v10 = vmul.f32 %v1561_v60, %v2144_v6  ;;  %v1507_v13 = vmul.f32 -1.442695, %v2215_v62  ;;  %v1566_v34 = vunpack.c.h.bf16 %v1584_v19 }
  0x27   : > { %1935 = vpow2.f32 %v1515_v54  ;;  %v481_v17 = vmul.f32 %v1562_v4, %v2144_v6  ;;  %v482_v40 = vmul.f32 %v1565_v24, %v2144_v6  ;;  %v1569_v56 = vunpack.c.l.bf16 %v1585_v45 }
  0x28   : > { %1937 = vpow2.f32 %v1504_v57  ;;  %v2222_v18 = vadd.f32 %v2147_v8, %v480_v10  ;;  %v483_v44 = vmul.f32 %v1566_v34, %v2144_v6 }
  0x29   : > { %1939 = vpow2.f32 %v1505_v58  ;;  %v2227_v32 = vadd.f32 %v2147_v8, %v481_v17 }
  0x2a   : > { %v1922_v61 = vpop.eup %1921  ;;  %v1508_v33 = vmul.f32 -1.442695, %v2222_v18  ;;  %v2251_v60 = vadd.f32 %v2147_v8, %v483_v44 }
  0x2b   : > { %v1924_v63 = vpop.eup %1923  ;;  %v554_v0 = vadd.f32 1.0, %v1922_v61  ;;  %v1509_v43 = vmul.f32 -1.442695, %v2227_v32  ;;  %v1570_v61 = vunpack.c.h.bf16 %v1585_v45 }
  0x2c   : > { %v1926_v2 = vpop.eup %1925  ;;  %v555_v3 = vadd.f32 1.0, %v1924_v63  ;;  %v1511_v10 = vmul.f32 -1.442695, %v2251_v60 }
  0x2d   : > { %v1928_v5 = vpop.eup %1927  ;;  %1941 = vrcp.f32 %v554_v0  ;;  %v556_v7 = vadd.f32 1.0, %v1926_v2  ;;  %v651_v2 = vstv %s650_s11  ;;  %s1497_s11 = sshll.u32 %s429_s10, 3 }
  0x2e   : > { %v1930_v11 = vpop.eup %1929  ;;  %1943 = vrcp.f32 %v555_v3  ;;  %v557_v12 = vadd.f32 1.0, %v1928_v5  ;;  %s431_s28 = scalar_lea.vmem %s2755_s6, %s1497_s11 }
  0x2f   : > { %v1932_v14 = vpop.eup %1931  ;;  %1945 = vrcp.f32 %v556_v7  ;;  %v558_v15 = vadd.f32 1.0, %v1930_v11  ;;  %v484_v7 = vmul.f32 %v1569_v56, %v2144_v6  ;;  %v485_v11 = vmul.f32 %v1570_v61, %v2144_v6 }
  0x30   : > { %1947 = vrcp.f32 %v557_v12  ;;  %v559_v16 = vadd.f32 1.0, %v1932_v14  ;;  %v1934_v20 = vpop.eup %1933 }
  0x31   : > { %1949 = vpow2.f32 %v1506_v9  ;;  %v1936_v21 = vpop.eup %1935  ;;  %v640_v22 = vadd.f32 1.0, %v1934_v20  ;;  %v2275_v17 = vadd.f32 %v2147_v8, %v484_v7 }
  0x32   : > { %1951 = vpow2.f32 %v1507_v13  ;;  %v641_v23 = vadd.f32 1.0, %v1936_v21  ;;  %v1938_v25 = vpop.eup %1937  ;;  %v2283_v21 = vadd.f32 %v2147_v8, %v485_v11 }
  0x33   : > { %1953 = vrcp.f32 %v558_v15  ;;  %v1940_v35 = vpop.eup %1939  ;;  %v560_v39 = vadd.f32 1.0, %v1938_v25  ;;  %v1512_v34 = vmul.f32 -1.442695, %v2275_v17 }
  0x34   : > { %1955 = vrcp.f32 %v559_v16  ;;  %v561_v47 = vadd.f32 1.0, %v1940_v35 }
  0x35   : > { %1957 = vrcp.f32 %v640_v22 }
  0x36   : > { %1959 = vrcp.f32 %v641_v23 }
  0x37   : > { %v1942_v36 = vpop.eup %1941  ;;  %1961 = vpow2.f32 %v1508_v33 }
  0x38   : > { %v1944_v37 = vpop.eup %1943  ;;  %v602_v38 = vmul.f32 %v1942_v36, %v2160_v26  ;;  %1963 = vrcp.f32 %v560_v39  ;;  %v821_v39 = vld [vmem:[%s2754_s5] sm:$0xff] }
  0x39   : > { %v1946_v41 = vpop.eup %1945  ;;  %v603_v42 = vmul.f32 %v1944_v37, %v2163_v27  ;;  %v2244_v27 = vadd.f32 %v2147_v8, %v482_v40  ;;  %1965 = vpow2.f32 %v1509_v43 }
  0x3a   : > { %v1948_v46 = vpop.eup %1947  ;;  %v604_v26 = vmul.f32 %v1946_v41, %v2166_v28  ;;  %1967 = vrcp.f32 %v561_v47 }
  0x3b   : > { %v1950_v52 = vpop.eup %1949  ;;  %v2238_v53 = vpack.c.bf16 %v603_v42, %v602_v38  ;;  %v605_v54 = vmul.f32 %v1948_v46, %v2169_v29  ;;  %v1510_v5 = vmul.f32 -1.442695, %v2244_v27  ;;  %v1513_v38 = vmul.f32 -1.442695, %v2283_v21 }
  0x3c   : > { %v1952_v55 = vpop.eup %1951  ;;  %v562_v29 = vadd.f32 1.0, %v1950_v52 }
  0x3d   : > { %v1954_v57 = vpop.eup %1953  ;;  %v2248_v58 = vsel %vm827_vm1, %v2238_v53, 0  ;;  %v2255_v0 = vpack.c.bf16 %v605_v54, %v604_v26  ;;  %v563_v13 = vadd.f32 1.0, %v1952_v55  ;;  %v692_v20 = vshrl.u32 %v2238_v53, 16  ;;  %v1576_v54 = vld [vmem:[%s419_s8] sm:$0xff]  }
  0x3e   : > { %v1956_v28 = vpop.eup %1955  ;;  %1748 = vmatpush3.bf16.xpose.msra.mxu0 %v2248_v58  ;;  %1969 = vrcp.f32 %v562_v29  ;;  %v606_v15 = vmul.f32 %v1954_v57, %v2173_v30  ;;  %v695_v37 = vshll.u32 %v2238_v53, 16 }
  0x3f   : > { %v1958_v63 = vpop.eup %1957  ;;  %1749 = vmatprep.subr.bf16.mxu0 %v2041_v1  ;;  %v2270_v14 = vsel %vm827_vm1, %v2255_v0, 0  ;;  %v607_v16 = vmul.f32 %v1956_v28, %v2176_v31  ;;  %1971 = vpow2.f32 %v1510_v5  ;;  %v694_v36 = vrot.slane %v692_v20, 7 }
  0x40   : > { %v1960_v3 = vpop.eup %1959  ;;  %v646_v4 = vmul.f32 %v1958_v63, %v2196_v49  ;;  %1973 = vpow2.f32 %v1511_v10  ;;  %v699_v26 = vshrl.u32 %v2255_v0, 16  ;;  %v1577_v28 = vunpack.c.l.bf16 %v1576_v54 }
  0x41   : > { %v647_v9 = vmul.f32 %v1960_v3, %v2199_v50  ;;  %v1962_v49 = vpop.eup %1961  ;;  %1975 = vrcp.f32 %v563_v13  ;;  %v2291_v25 = vpack.c.bf16 %v607_v16, %v606_v15  ;;  %v697_v52 = vor.u32 %v695_v37, %v694_v36 }
  0x42   : > { %v652_v12 = vmul.f32 %v651_v2, %v646_v4  ;;  %v1964_v22 = vpop.eup %1963  ;;  %v564_v30 = vadd.f32 1.0, %v1962_v49  ;;  %v701_v63 = vrot.slane %v699_v26, 7  ;;  %v1578_v10 = vunpack.c.h.bf16 %v1576_v54 }
  0x43   : > { %v653_v50 = vmul.f32 %v651_v2, %v647_v9  ;;  %v1966_v31 = vpop.eup %1965  ;;  %v2306_v42 = vsel %vm827_vm1, %v2291_v25, 0  ;;  %v608_v43 = vmul.f32 %v1964_v22, %v2193_v48  ;;  %v768_v29 = vsel %vm2300_vm4, 0, %v697_v52 }
  0x44   : > { %v1968_v33 = vpop.eup %1967  ;;  %v565_v40 = vadd.f32 1.0, %v1966_v31  ;;  %1977 = vrcp.f32 %v564_v30  ;;  %v702_v2 = vshll.u32 %v2255_v0, 16  ;;  %v659_v13 = vmul.f32 %v1577_v28, %v2144_v6 }
  0x45   : > { %v2279_v19 = vpack.c.bf16 %v653_v50, %v652_v12  ;;  %v609_v44 = vmul.f32 %v1968_v33, %v2202_v51  ;;  %1979 = vpow2.f32 %v1512_v34  ;;  %v2338_v12 = vsel %vm827_vm1, %v768_v29, 0 }
  0x46   : > { %1750 = vmatpush3.bf16.xpose.msra.mxu0 %v2270_v14  ;;  %1981 = vpow2.f32 %v1513_v38  ;;  %v704_v49 = vor.u32 %v702_v2, %v701_v63  ;;  %v706_v50 = vshrl.u32 %v2291_v25, 16  ;;  %v709_v33 = vshll.u32 %v2291_v25, 16 }
  0x47   : > { %v685_v23 = vshrl.u32 %v2279_v19, 16  ;;  %v688_v24 = vshll.u32 %v2279_v19, 16  ;;  %1751 = vmatprep.subr.bf16.mxu0 %v2041_v1  ;;  %1983 = vrcp.f32 %v565_v40  ;;  %v2321_v56 = vpack.c.bf16 %v609_v44, %v608_v43 }
  0x48   : > { %v1970_v45 = vpop.eup %1969  ;;  %v783_v0 = vrot.slane %v709_v33, 1 }
  0x49   : > { %v687_v35 = vrot.slane %v685_v23, 7  ;;  %v777_v46 = vrot.slane %v688_v24, 1  ;;  %v1972_v48 = vpop.eup %1971  ;;  %v2333_v5 = vsel %vm827_vm1, %v2321_v56, 0  ;;  %v610_v7 = vmul.f32 %v1970_v45, %v2212_v59 }
  0x4a   : > { %v1974_v55 = vpop.eup %1973  ;;  %v566_v3 = vadd.f32 1.0, %v1972_v48  ;;  %v660_v59 = vmul.f32 %v1578_v10, %v2144_v6  ;;  %v769_v6 = vsel %vm2300_vm4, 0, %v704_v49  ;;  %v713_v44 = vshrl.u32 %v2321_v56, 16 }
  0x4b   : > { %v690_v41 = vor.u32 %v688_v24, %v687_v35  ;;  %v1976_v57 = vpop.eup %1975  ;;  %v2324_v61 = vor.u32 %v777_v46, %v685_v23  ;;  %v567_v4 = vadd.f32 1.0, %v1974_v55  ;;  %v708_v24 = vrot.slane %v706_v50, 7 }
  0x4c   : > { %v611_v9 = vmul.f32 %v1976_v57, %v2215_v62  ;;  %1985 = vrcp.f32 %v566_v3  ;;  %v2347_v62 = vadd.f32 %v659_v13, %v2147_v8  ;;  %v2355_v31 = vadd.f32 %v660_v59, %v2147_v8 }
  0x4d   : > { %v767_v47 = vsel %vm2300_vm4, 0, %v690_v41  ;;  %1987 = vrcp.f32 %v567_v4  ;;  %v2371_v41 = vsel %vm827_vm1, %v769_v6, 0  ;;  %v711_v43 = vor.u32 %v709_v33, %v708_v24 }
  0x4e   : > { %v832_v51 = vsel %vm827_vm1, %v767_v47, 0  ;;  %1752 = vmatpush3.bf16.xpose.msra.mxu0 %v2306_v42  ;;  %v1978_v11 = vpop.eup %1977  ;;  %v2351_v22 = vpack.c.bf16 %v611_v9, %v610_v7  ;;  %v1516_v23 = vmul.f32 -1.442695, %v2347_v62  ;;  %v1517_v40 = vmul.f32 -1.442695, %v2355_v31 }
  0x4f   : > { %1668 = vmatpush3.bf16.xpose.msra.mxu1 %v832_v51  ;;  %1753 = vmatprep.subr.bf16.mxu0 %v2041_v1  ;;  %v1980_v15 = vpop.eup %1979  ;;  %v612_v8 = vmul.f32 %v1978_v11, %v2222_v18  ;;  %v770_v46 = vsel %vm2300_vm4, 0, %v711_v43  ;;  %v715_v47 = vrot.slane %v713_v44, 7  ;;  %v716_v52 = vshll.u32 %v2321_v56, 16 }
  0x50   : > { %1669 = vmatprep.subr.bf16.mxu1 %v2041_v1  ;;  %v1982_v16 = vpop.eup %1981  ;;  %v568_v34 = vadd.f32 1.0, %v1980_v15  ;;  %1989 = vpow2.f32 %v1516_v23  ;;  %v2365_v36 = vsel %vm827_vm1, %v2351_v22, 0  ;;  %v2394_v57 = vsel %vm827_vm1, %v770_v46, 0 }
  0x51   : > { %v1984_v30 = vpop.eup %1983  ;;  %v569_v35 = vadd.f32 1.0, %v1982_v16  ;;  %v718_v28 = vor.u32 %v716_v52, %v715_v47  ;;  %v720_v29 = vshrl.u32 %v2351_v22, 16  ;;  %v723_v10 = vshll.u32 %v2351_v22, 16 }
  0x52   : > { %v613_v38 = vmul.f32 %v1984_v30, %v2227_v32  ;;  %1991 = vrcp.f32 %v568_v34  ;;  %v781_v47 = vrot.slane %v702_v2, 1 }
  0x53   : > { %1993 = vrcp.f32 %v569_v35  ;;  %v771_v7 = vsel %vm2300_vm4, 0, %v718_v28  ;;  %v722_v9 = vrot.slane %v720_v29, 7 }
  0x54   : > { %v2379_v18 = vpack.c.bf16 %v613_v38, %v612_v8  ;;  %1995 = vpow2.f32 %v1517_v40  ;;  %v2418_v59 = vsel %vm827_vm1, %v771_v7, 0  ;;  %v680_v40 = vstv %s679_s19 }
  0x55   : > { %v725_v16 = vor.u32 %v723_v10, %v722_v9 }
  0x56   : > { %1754 = vmatpush3.bf16.xpose.msra.mxu0 %v2333_v5  ;;  %v1986_v45 = vpop.eup %1985  ;;  %v2389_v54 = vsel %vm827_vm1, %v2379_v18, 0  ;;  %v727_v30 = vshrl.u32 %v2379_v18, 16  ;;  %v730_v34 = vshll.u32 %v2379_v18, 16 }
  0x57   : > { %1670 = vmatpush3.bf16.xpose.msra.mxu1 %v2338_v12  ;;  %1755 = vmatprep.subr.bf16.mxu0 %v2041_v1  ;;  %v1988_v32 = vpop.eup %1987  ;;  %v614_v48 = vmul.f32 %v1986_v45, %v2244_v27  ;;  %v772_v6 = vsel %vm2300_vm4, 0, %v725_v16  ;;  %v820_v16 = vld [vmem:[%s2753_s4] sm:$0xf] }
  0x58   : > { %1671 = vmatprep.subr.bf16.mxu1 %v2041_v1  ;;  %v615_v51 = vmul.f32 %v1988_v32, %v2251_v60  ;;  %v729_v24 = vrot.slane %v727_v30, 7 }
  0x5a   : > { %v1990_v55 = vpop.eup %1989  ;;  %v2402_v27 = vpack.c.bf16 %v615_v51, %v614_v48  ;;  %v732_v43 = vor.u32 %v730_v34, %v729_v24 }
  0x5b   : > { %v669_v63 = vadd.f32 1.0, %v1990_v55 }
  0x5c   : > { %v1992_v3 = vpop.eup %1991  ;;  %v2413_v13 = vsel %vm827_vm1, %v2402_v27, 0  ;;  %v734_v32 = vshrl.u32 %v2402_v27, 16  ;;  %v773_v48 = vsel %vm2300_vm4, 0, %v732_v43  ;;  %v737_v55 = vshll.u32 %v2402_v27, 16 }
  0x5d   : > { %1997 = vrcp.f32 %v669_v63  ;;  %v1994_v60 = vpop.eup %1993  ;;  %v616_v49 = vmul.f32 %v1992_v3, %v2275_v17  ;;  %v2478_v2 = vsel %vm827_vm1, %v773_v48, 0 }
  0x5e   : > { %1756 = vmatpush3.bf16.xpose.msra.mxu0 %v2365_v36  ;;  %v1996_v4 = vpop.eup %1995  ;;  %v617_v15 = vmul.f32 %v1994_v60, %v2283_v21  ;;  %v779_v21 = vrot.slane %v695_v37, 1  ;;  %v2444_v37 = vsel %vm827_vm1, %v772_v6, 0  ;;  %v736_v51 = vrot.slane %v734_v32, 7 }
  0x5f   : > { %1672 = vmatpush3.bf16.xpose.msra.mxu1 %v2371_v41  ;;  %1757 = vmatprep.subr.bf16.mxu0 %v2041_v1  ;;  %v670_v11 = vadd.f32 1.0, %v1996_v4  ;;  %v782_v60 = vor.u32 %v781_v47, %v699_v26 }
  0x60   : > { %1673 = vmatprep.subr.bf16.mxu1 %v2041_v1  ;;  %v2428_v17 = vpack.c.bf16 %v617_v15, %v616_v49  ;;  %v780_v38 = vor.u32 %v779_v21, %v692_v20  ;;  %v739_v4 = vor.u32 %v737_v55, %v736_v51  ;;  %v784_v49 = vor.u32 %v783_v0, %v706_v50 }
  0x61   : > { %1999 = vrcp.f32 %v670_v11  ;;  %v812_v7 = vsel %vm2450_vm7, %v782_v60, 0  ;;  %v785_v15 = vrot.slane %v716_v52, 1  ;;  %v900_v50 = vsel %vm827_vm1, %v2279_v19, 0 }
  0x62   : > { %v2440_v35 = vsel %vm827_vm1, %v2428_v17, 0  ;;  %v774_v26 = vsel %vm2300_vm4, 0, %v739_v4  ;;  %v2496_v9 = vsel %vm827_vm1, %v812_v7, 0  ;;  %v813_v33 = vsel %vm2450_vm7, %v784_v49, 0  ;;  %v1529_v4 = vld [vmem:[%s2753_s4 + $0x18] sm:$0xf] }
  0x63   : > { %v2499_v11 = vsel %vm827_vm1, %v774_v26, 0  ;;  %v2515_v25 = vsel %vm827_vm1, %v813_v33, 0  ;;  %v786_v21 = vor.u32 %v785_v15, %v713_v44  ;;  %v744_v18 = vshll.u32 %v2428_v17, 16 }
  0x64   : > { %v2043_v7 = vmov 0  }
  0x65   : > { %v814_v52 = vsel %vm2450_vm7, %v786_v21, 0  ;;  %1920 = vset.pattern.permute.xlu0 %v2043_v7 }
  0x66   : > { %1758 = vmatpush3.bf16.xpose.msra.mxu0 %v2389_v54  ;;  %v2532_v19 = vsel %vm827_vm1, %v814_v52, 0  ;;  %824 = vperm.xlu0 %1920, %v821_v39  }
  0x67   : > { %1674 = vmatpush3.bf16.xpose.msra.mxu1 %v2394_v57  ;;  %1759 = vmatprep.subr.bf16.mxu0 %v2041_v1  ;;  %v1998_v23 = vpop.eup %1997 }
  0x68   : > { %1675 = vmatprep.subr.bf16.mxu1 %v2041_v1  ;;  %v675_v8 = vmul.f32 %v1998_v23, %v2347_v62  ;;  %v811_v62 = vsel %vm2450_vm7, %v780_v38, 0  ;;  %v787_v23 = vrot.slane %v723_v10, 1  ;;  %v789_v10 = vrot.slane %v730_v34, 1 }
  0x69   : > { %v2473_v63 = vsel %vm827_vm1, %v811_v62, 0  ;;  %v793_v38 = vrot.slane %v744_v18, 1 }
  0x6a   : > { %v681_v20 = vmul.f32 %v680_v40, %v675_v8  ;;  %v788_v56 = vor.u32 %v787_v23, %v720_v29  ;;  %v790_v22 = vor.u32 %v789_v10, %v727_v30  ;;  %v791_v29 = vrot.slane %v737_v55, 1 }
  0x6b   : > { %v2000_v46 = vpop.eup %1999  ;;  %v741_v8 = vshrl.u32 %v2428_v17, 16  ;;  %v1527_v17 = vld [vmem:[%s2753_s4 + $0x14] sm:$0xf] }
  0x6c   : > { %v676_v53 = vmul.f32 %v2000_v46, %v2355_v31  ;;  %v1525_v31 = vld [vmem:[%s2753_s4 + $0x10] sm:$0xf]  ;;  %v815_v44 = vsel %vm2450_vm7, %v788_v56, 0  ;;  %v792_v34 = vor.u32 %v791_v29, %v734_v32  ;;  %v810_v46 = vsel %vm2450_vm7, %v2324_v61, 0 }
  0x6d   : > { %v2545_v6 = vsel %vm827_vm1, %v815_v44, 0  ;;  %v794_v27 = vor.u32 %v793_v38, %v741_v8  ;;  %v743_v61 = vrot.slane %v741_v8, 7 }
  0x6e   : > { %1760 = vmatpush3.bf16.xpose.msra.mxu0 %v2413_v13  ;;  %v682_v28 = vmul.f32 %v680_v40, %v676_v53  ;;  %v817_v30 = vsel %vm2450_vm7, %v792_v34, 0  ;;  %v1519_v53 = vld [vmem:[%s2753_s4 + $0x4] sm:$0xf] }
  0x6f   : > { %1676 = vmatpush3.bf16.xpose.msra.mxu1 %v2418_v59  ;;  %1761 = vmatprep.subr.bf16.mxu0 %v2041_v1  ;;  %v2569_v40 = vsel %vm827_vm1, %v817_v30, 0  ;;  %v818_v43 = vsel %vm2450_vm7, %v794_v27, 0  ;;  %v746_v62 = vor.u32 %v744_v18, %v743_v61 }
  0x70   : > { %1677 = vmatprep.subr.bf16.mxu1 %v2041_v1  ;;  %v2475_v3 = vpack.c.bf16 %v682_v28, %v681_v20  ;;  %v2578_v32 = vsel %vm827_vm1, %v818_v43, 0  ;;  %v963_v20 = vsel %vm827_vm1, %v810_v46, 0 }
  0x71   : > { %v775_v48 = vsel %vm2300_vm4, 0, %v746_v62 }
  0x72   : > { %v748_v47 = vshrl.u32 %v2475_v3, 16  ;;  %v751_v55 = vshll.u32 %v2475_v3, 16  ;;  %v1033_v28 = vsel %vm827_vm1, %v775_v48, 0 }
  0x74   : > { %v750_v51 = vrot.slane %v748_v47, 7 }
  0x76   : > { %1762 = vmatpush3.bf16.xpose.msra.mxu0 %v2440_v35 }
  0x77   : > { %1678 = vmatpush3.bf16.xpose.msra.mxu1 %v2444_v37  ;;  %1767 = vmatprep.subr.bf16.mxu0 %v2041_v1 }
  0x78   : > { %1679 = vmatprep.subr.bf16.mxu1 %v2041_v1 }
  0x7d   : > { %1764 = vmatmul.mubr.msk.bf16.vlgmr.msra.gmra.mrb[0].mxu0 %vm827_vm1, %v1525_v31  ;;  %v753_v31 = vor.u32 %v751_v55, %v750_v51 }
  0x7e   : > { %1768 = vmatpush3.bf16.xpose.msra.mxu0 %v2473_v63  ;;  %1783 = vmatprep.mubr.msk.bf16.mxu0 %vm2042_vm0, %v2041_v1 }
  0x7f   : > { %1680 = vmatpush3.bf16.xpose.msra.mxu1 %v2478_v2  ;;  %1769 = vmatprep.subr.bf16.mxu0 %v2041_v1 }
  0x80   : > { %1681 = vmatprep.subr.bf16.mxu1 %v2041_v1 }
  0x86   : > { %1770 = vmatpush3.bf16.xpose.msra.mxu0 %v2496_v9 }
  0x87   : > { %1682 = vmatpush3.bf16.xpose.msra.mxu1 %v2499_v11  ;;  %1771 = vmatprep.subr.bf16.mxu0 %v2041_v1 }
  0x88   : > { %1687 = vmatprep.subr.bf16.mxu1 %v2041_v1 }
  0x8e   : > { %1684 = vmatmul.mubr.msk.bf16.vlgmr.msra.gmra.mrb[0].mxu1 %vm827_vm1, %v820_v16  ;;  %1772 = vmatpush3.bf16.xpose.msra.mxu0 %v2515_v25 }
  0x8f   : > { %1688 = vmatpush3.bf16.xpose.msra.mxu1 %v900_v50  ;;  %1773 = vmatprep.subr.bf16.mxu0 %v2041_v1 }
  0x90   : > { %1689 = vmatprep.subr.bf16.mxu1 %v2041_v1  ;;  %1703 = vmatprep.mubr.msk.bf16.mxu1 %vm2042_vm0, %v2041_v1 }
  0x96   : > { %1774 = vmatpush3.bf16.xpose.msra.mxu0 %v2532_v19 }
  0x97   : > { %1690 = vmatpush3.bf16.xpose.msra.mxu1 %v2248_v58  ;;  %1775 = vmatprep.subr.bf16.mxu0 %v2041_v1  ;;  %v816_v58 = vsel %vm2450_vm7, %v790_v22, 0 }
  0x98   : > { %1691 = vmatprep.subr.bf16.mxu1 %v2041_v1  ;;  %v2556_v24 = vsel %vm827_vm1, %v816_v58, 0 }
  0x9e   : > { %1776 = vmatpush3.bf16.xpose.msra.mxu0 %v2545_v6 }
  0x9f   : > { %1692 = vmatpush3.bf16.xpose.msra.mxu1 %v2270_v14  ;;  %1777 = vmatprep.subr.bf16.mxu0 %v2041_v1 }
  0xa0   : > { %1693 = vmatprep.subr.bf16.mxu1 %v2041_v1 }
  0xa6   : > { %1778 = vmatpush3.bf16.xpose.msra.mxu0 %v2556_v24 }
  0xa7   : > { %1694 = vmatpush3.bf16.xpose.msra.mxu1 %v2306_v42  ;;  %1779 = vmatprep.subr.bf16.mxu0 %v2041_v1 }
  0xa8   : > { %1695 = vmatprep.subr.bf16.mxu1 %v2041_v1 }
  0xae   : > { %1780 = vmatpush3.bf16.xpose.msra.mxu0 %v2569_v40 }
  0xaf   : > { %1696 = vmatpush3.bf16.xpose.msra.mxu1 %v2333_v5  ;;  %1781 = vmatprep.subr.bf16.mxu0 %v2041_v1 }
  0xb0   : > { %1697 = vmatprep.subr.bf16.mxu1 %v2041_v1 }
  0xb6   : > { %1782 = vmatpush3.bf16.xpose.msra.mxu0 %v2578_v32 }
  0xb7   : > { %1698 = vmatpush3.bf16.xpose.msra.mxu1 %v2365_v36  ;;  %1787 = vmatprep.subr.bf16.mxu0 %v2041_v1 }
  0xb8   : > { %1699 = vmatprep.subr.bf16.mxu1 %v2041_v1 }
  0xbd   : > { %1784 = vmatmul.mubr.msk.bf16.vlgmr.msra.gmra.mrb[0].mxu0 %vm827_vm1, %v1527_v17 }
  0xbe   : > { %1788 = vmatpush3.bf16.xpose.msra.mxu0 %v2371_v41  ;;  %1803 = vmatprep.mubr.msk.bf16.mxu0 %vm2042_vm0, %v2041_v1 }
  0xbf   : > { %1700 = vmatpush3.bf16.xpose.msra.mxu1 %v2389_v54  ;;  %1789 = vmatprep.subr.bf16.mxu0 %v2041_v1 }
  0xc0   : > { %1701 = vmatprep.subr.bf16.mxu1 %v2041_v1 }
  0xc6   : > { %1790 = vmatpush3.bf16.xpose.msra.mxu0 %v2394_v57 }
  0xc7   : > { %1702 = vmatpush3.bf16.xpose.msra.mxu1 %v2413_v13  ;;  %1791 = vmatprep.subr.bf16.mxu0 %v2041_v1 }
  0xc8   : > { %1707 = vmatprep.subr.bf16.mxu1 %v2041_v1 }
  0xce   : > { %1704 = vmatmul.mubr.msk.bf16.vlgmr.msra.gmra.mrb[0].mxu1 %vm827_vm1, %v1519_v53  ;;  %1792 = vmatpush3.bf16.xpose.msra.mxu0 %v2418_v59 }
  0xcf   : > { %1708 = vmatpush3.bf16.xpose.msra.mxu1 %v963_v20  ;;  %1793 = vmatprep.subr.bf16.mxu0 %v2041_v1 }
  0xd0   : > { %1709 = vmatprep.subr.bf16.mxu1 %v2041_v1  ;;  %1723 = vmatprep.mubr.msk.bf16.mxu1 %vm2042_vm0, %v2041_v1 }
  0xd6   : > { %1794 = vmatpush3.bf16.xpose.msra.mxu0 %v2444_v37 }
  0xd7   : > { %1710 = vmatpush3.bf16.xpose.msra.mxu1 %v2473_v63  ;;  %1795 = vmatprep.subr.bf16.mxu0 %v2041_v1  ;;  %v776_v63 = vsel %vm2300_vm4, 0, %v753_v31 }
  0xd8   : > { %1711 = vmatprep.subr.bf16.mxu1 %v2041_v1  ;;  %v1179_v60 = vsel %vm827_vm1, %v776_v63, 0 }
  0xde   : > { %1796 = vmatpush3.bf16.xpose.msra.mxu0 %v2478_v2 }
  0xdf   : > { %1712 = vmatpush3.bf16.xpose.msra.mxu1 %v2496_v9  ;;  %1797 = vmatprep.subr.bf16.mxu0 %v2041_v1 }
  0xe0   : > { %1713 = vmatprep.subr.bf16.mxu1 %v2041_v1 }
  0xe6   : > { %1798 = vmatpush3.bf16.xpose.msra.mxu0 %v2499_v11 }
  0xe7   : > { %1714 = vmatpush3.bf16.xpose.msra.mxu1 %v2515_v25  ;;  %1799 = vmatprep.subr.bf16.mxu0 %v2041_v1 }
  0xe8   : > { %1715 = vmatprep.subr.bf16.mxu1 %v2041_v1 }
  0xee   : > { %1800 = vmatpush3.bf16.xpose.msra.mxu0 %v1033_v28 }
  0xef   : > { %1716 = vmatpush3.bf16.xpose.msra.mxu1 %v2532_v19  ;;  %1801 = vmatprep.subr.bf16.mxu0 %v2041_v1 }
  0xf0   : > { %1717 = vmatprep.subr.bf16.mxu1 %v2041_v1 }
  0xf6   : > { %1802 = vmatpush3.bf16.xpose.msra.mxu0 %v1179_v60 }
  0xf7   : > { %1718 = vmatpush3.bf16.xpose.msra.mxu1 %v2545_v6  ;;  %1807 = vmatprep.subr.bf16.mxu0 %v2041_v1 }
  0xf8   : > { %1719 = vmatprep.subr.bf16.mxu1 %v2041_v1 }
  0xfd   : > { %1804 = vmatmul.mubr.msk.bf16.vlgmr.msra.gmra.mrb[0].mxu0 %vm827_vm1, %v1529_v4 }
  0xfe   : > { %1808 = vmatpush3.bf16.xpose.msra.mxu0 %v2270_v14  ;;  %1823 = vmatprep.mubr.msk.bf16.mxu0 %vm2042_vm0, %v2041_v1  ;;  %v1521_v14 = vld [vmem:[%s2753_s4 + $0x8] sm:$0xf] }
  0xff   : > { %1720 = vmatpush3.bf16.xpose.msra.mxu1 %v2556_v24  ;;  %1809 = vmatprep.subr.bf16.mxu0 %v2041_v1 }
 0x100   : > { %1721 = vmatprep.subr.bf16.mxu1 %v2041_v1 }
 0x106   : > { %1810 = vmatpush3.bf16.xpose.msra.mxu0 %v2306_v42  ;;  %v1227_v42 = vsel %vm827_vm1, %v2475_v3, 0 }
 0x107   : > { %1722 = vmatpush3.bf16.xpose.msra.mxu1 %v2569_v40  ;;  %1811 = vmatprep.subr.bf16.mxu0 %v2041_v1 }
 0x108   : > { %1727 = vmatprep.subr.bf16.mxu1 %v2041_v1 }
 0x10e   : > { %1724 = vmatmul.mubr.msk.bf16.vlgmr.msra.gmra.mrb[0].mxu1 %vm827_vm1, %v1521_v14  ;;  %1812 = vmatpush3.bf16.xpose.msra.mxu0 %v2333_v5  ;;  %v1531_v5 = vld [vmem:[%s2753_s4 + $0x1c] sm:$0xf] }
 0x10f   : > { %1728 = vmatpush3.bf16.xpose.msra.mxu1 %v2338_v12  ;;  %1813 = vmatprep.subr.bf16.mxu0 %v2041_v1  ;;  %v1523_v12 = vld [vmem:[%s2753_s4 + $0xc] sm:$0xf] }
 0x110   : > { %1729 = vmatprep.subr.bf16.mxu1 %v2041_v1  ;;  %1743 = vmatprep.mubr.msk.bf16.mxu1 %vm2042_vm0, %v2041_v1 }
 0x116   : > { %1814 = vmatpush3.bf16.xpose.msra.mxu0 %v2365_v36  ;;  %v795_v36 = vrot.slane %v751_v55, 1 }
 0x117   : > { %1730 = vmatpush3.bf16.xpose.msra.mxu1 %v2371_v41  ;;  %1815 = vmatprep.subr.bf16.mxu0 %v2041_v1 }
 0x118   : > { %1731 = vmatprep.subr.bf16.mxu1 %v2041_v1  ;;  %v796_v41 = vor.u32 %v795_v36, %v748_v47 }
 0x11e   : > { %1816 = vmatpush3.bf16.xpose.msra.mxu0 %v2389_v54  ;;  %v819_v54 = vsel %vm2450_vm7, %v796_v41, 0 }
 0x11f   : > { %1732 = vmatpush3.bf16.xpose.msra.mxu1 %v2394_v57  ;;  %1817 = vmatprep.subr.bf16.mxu0 %v2041_v1  ;;  %v1276_v57 = vsel %vm827_vm1, %v819_v54, 0 }
 0x120   : > { %1733 = vmatprep.subr.bf16.mxu1 %v2041_v1 }
 0x126   : > { %1818 = vmatpush3.bf16.xpose.msra.mxu0 %v2413_v13  ;;  %v1533_v13 = vld [vmem:[%s2753_s4 + $0x20] sm:$0xf] }
 0x127   : > { %1734 = vmatpush3.bf16.xpose.msra.mxu1 %v2418_v59  ;;  %1819 = vmatprep.subr.bf16.mxu0 %v2041_v1 }
 0x128   : > { %1735 = vmatprep.subr.bf16.mxu1 %v2041_v1 }
 0x12e   : > { %1820 = vmatpush3.bf16.xpose.msra.mxu0 %v2440_v35 }
 0x12f   : > { %1736 = vmatpush3.bf16.xpose.msra.mxu1 %v2444_v37  ;;  %1821 = vmatprep.subr.bf16.mxu0 %v2041_v1 }
 0x130   : > { %1737 = vmatprep.subr.bf16.mxu1 %v2041_v1 }
 0x136   : > { %1822 = vmatpush3.bf16.xpose.msra.mxu0 %v1227_v42 }
 0x137   : > { %1738 = vmatpush3.bf16.xpose.msra.mxu1 %v2478_v2  ;;  %1827 = vmatprep.subr.bf16.mxu0 %v2041_v1 }
 0x138   : > { %1739 = vmatprep.subr.bf16.mxu1 %v2041_v1 }
 0x13d   : > { %1824 = vmatmul.mubr.msk.bf16.vlgmr.msra.gmra.mrb[0].mxu0 %vm827_vm1, %v1531_v5 }
 0x13e   : > { %1828 = vmatpush3.bf16.xpose.msra.mxu0 %v2496_v9  ;;  %1843 = vmatprep.mubr.msk.bf16.mxu0 %vm2042_vm0, %v2041_v1 }
 0x13f   : > { %1740 = vmatpush3.bf16.xpose.msra.mxu1 %v2499_v11  ;;  %1829 = vmatprep.subr.bf16.mxu0 %v2041_v1 }
 0x140   : > { %1741 = vmatprep.subr.bf16.mxu1 %v2041_v1 }
 0x146   : > { %1830 = vmatpush3.bf16.xpose.msra.mxu0 %v2515_v25 }
 0x147   : > { %1742 = vmatpush3.bf16.xpose.msra.mxu1 %v1033_v28  ;;  %1831 = vmatprep.subr.bf16.mxu0 %v2041_v1 }
 0x14e   : > { %1744 = vmatmul.mubr.msk.bf16.vlgmr.msra.gmra.mrb[0].mxu1 %vm827_vm1, %v1523_v12  ;;  %1832 = vmatpush3.bf16.xpose.msra.mxu0 %v2532_v19 }
 0x14f   : > { %1833 = vmatprep.subr.bf16.mxu0 %v2041_v1 }
 0x156   : > { %1834 = vmatpush3.bf16.xpose.msra.mxu0 %v2545_v6 }
 0x157   : > { %1835 = vmatprep.subr.bf16.mxu0 %v2041_v1 }
 0x15e   : > { %1836 = vmatpush3.bf16.xpose.msra.mxu0 %v2556_v24 }
 0x15f   : > { %1837 = vmatprep.subr.bf16.mxu0 %v2041_v1 }
 0x166   : > { %1838 = vmatpush3.bf16.xpose.msra.mxu0 %v2569_v40 }
 0x167   : > { %1839 = vmatprep.subr.bf16.mxu0 %v2041_v1 }
 0x16e   : > { %1840 = vmatpush3.bf16.xpose.msra.mxu0 %v2578_v32 }
 0x16f   : > { %1841 = vmatprep.subr.bf16.mxu0 %v2041_v1  ;;  %v825_v1 = vpop.permute.xlu0 %824 }
 0x176   : > { %1842 = vmatpush3.bf16.xpose.msra.mxu0 %v1276_v57 }
 0x17d   : > { %1844 = vmatmul.mubr.msk.bf16.vlgmr.msra.gmra.mrb[0].mxu0 %vm827_vm1, %v1533_v13 }
 0x221   : > { %v1069_v59 = vpop.f32.mrb[0].mxu1 }
 0x222   : > { %v1745_v35 = vpop.f32.mrb[1].mxu1  ;;  %v1847_v45 = vadd.f32 %v1069_v59, %v825_v1 }
 0x223   : > { %v1072_v37 = vpop.f32.mrb[2].mxu1 }
 0x224   : > { %v1746_v3 = vpop.f32.mrb[3].mxu1 }
 0x250   : > { %v1312_v2 = vpop.f32.mrb[0].mxu0 }
 0x251   : > { %v1848_v0 = vadd.f32 %v1847_v45, %v1312_v2  ;;  %v1845_v26 = vpop.f32.mrb[1].mxu0 }
 0x252   : > { %v1315_v9 = vpop.f32.mrb[2].mxu0 }
 0x253   : > { %1319 = vst [vmem:[%s431_s28] sm:$0xff] %v1848_v0  ;;  %v1846_v11 = vpop.f32.mrb[3].mxu0 }
 0x254 PF: > { %s16_s25 = sadd.s32 1, %s2039_s25   ;;  %s2761_s21 = smov %s2031_s23 }
 0x255   : > { %p13_p12 = scmp.ge.s32.totalorder %s16_s25, 6   ;;  %s2762_s22 = smov %s2035_s24 }
 0x256   : > { %s2763_s23 = smov %s2766_s26  ;;  %s2764_s24 = smov %s2770_s27 }
 0x257   :  { %15 = sbr.rel (!%p13_p12) target bundleno = 3 (0x3), region = 91 }

</bundles_post_ra>
